<compile_context>
chip_gen: v6e
topology: v6e:2x2x1
jax: 0.10.0
libtpu: 0.0.40
codegen_flags: <defaults>
</compile_context>

<pallas_src>
import math

import jax
import jax.numpy as jnp
from jax.experimental import pallas as pl
from jax.experimental.pallas import tpu as pltpu


def _gcn_fused_kernel(adj_ref, x_ref, w1_ref, b1_ref, w2_ref, b2_ref, s_ref, o_ref):
    """Whole GCN forward; this grid point writes one row tile of the output.

    out[rows] = (adj[rows] @ (relu(adj @ (x @ W1) + b1) @ W2) + b2) * w[rows]
    """
    i = pl.program_id(0)
    tm = o_ref.shape[0]
    bf = jnp.bfloat16

    # In-kernel bf16 casts of the MXU operands (no wrapper-side HBM cast pass).
    adj_bf = adj_ref[...].astype(bf)                 # (Np, Np); dies after layer 1
    x_bf = x_ref[...].astype(bf)
    w1_bf = w1_ref[...].astype(bf)
    w2_bf = w2_ref[...].astype(bf)

    # ---- Layer 1 (PyTorch contraction order: support = x @ W1, then adj @ support)
    s1 = jnp.dot(x_bf, w1_bf, preferred_element_type=jnp.float32)              # (Np, F)
    f1 = jnp.dot(adj_bf, s1.astype(bf), preferred_element_type=jnp.float32)    # (Np, F)
    feat1 = jnp.maximum(f1 + b1_ref[...], 0.0)                                 # f32 ReLU

    # ---- Layer 2: support_2 = feat_1 @ W2 once for all nodes (stays in VMEM),
    # then only this grid point's adj row tile is contracted against it.
    s2 = jnp.dot(feat1.astype(bf), w2_bf, preferred_element_type=jnp.float32)  # (Np, F)

    r0 = pl.multiple_of(i * tm, 8)
    adj_rows = adj_ref[pl.ds(r0, tm), :].astype(bf)                            # (tm, Np)
    emb = jnp.dot(adj_rows, s2.astype(bf), preferred_element_type=jnp.float32)

    # Fused epilogue: bias add + per-node reweight (VPU, f32), lane-dense store.
    o_ref[...] = ((emb + b2_ref[...]) * s_ref[...]).astype(o_ref.dtype)


def _round_up(v, m):
    return ((v + m - 1) // m) * m


def gcn_forward(x, w, adj, w1, b1, w2, b2, *, training=False):
    """GCN forward. Returns (output, w) exactly like the PyTorch module."""
    if training:
        # TODO(synk): training-mode dropout (pltpu.prng_seed / prng_random_bits)
        # not implemented; only eval (identity-dropout) semantics supported.
        raise NotImplementedError("training-mode dropout not implemented")

    n, feat = x.shape

    # Pad the node dimension only to a multiple of 16 (e.g. 200 -> 208) so the
    # output row axis splits into two multiple-of-8 tiles.  Zero rows/cols of
    # adj contribute nothing; padded output rows are sliced off afterwards.
    num_tiles = 2          # 2-way "parallel" row split -> both TensorCores on v7x.
    n_pad = _round_up(n, 8 * num_tiles)
    tm = n_pad // num_tiles
    pad = n_pad - n
    if pad:
        adj = jnp.pad(adj, ((0, pad), (0, pad)))
        x = jnp.pad(x, ((0, pad), (0, 0)))
        w_pad = jnp.pad(w, ((0, pad), (0, 0)))
    else:
        w_pad = w

    in_specs = [
        pl.BlockSpec((n_pad, n_pad), lambda i: (0, 0)),   # adj, resident (single HBM read)
        pl.BlockSpec((n_pad, feat), lambda i: (0, 0)),    # x, resident
        pl.BlockSpec((feat, feat), lambda i: (0, 0)),     # W1, resident
        pl.BlockSpec((1, feat), lambda i: (0, 0)),        # b1
        pl.BlockSpec((feat, feat), lambda i: (0, 0)),     # W2, resident
        pl.BlockSpec((1, feat), lambda i: (0, 0)),        # b2
        pl.BlockSpec((tm, 1), lambda i: (i, 0)),          # per-node reweight w (row tile)
    ]
    out_spec = pl.BlockSpec((tm, feat), lambda i: (i, 0))  # lane-dense output rows

    # VMEM footprint estimate: f32 inputs (lane dims rounded to 128, x2 buffers)
    # plus in-body bf16/f32 temporaries (adj_bf, s1, feat1, s2).
    lane = lambda d: _round_up(d, 128)
    footprint = (2 * n_pad * lane(n_pad) * 4            # adj
                 + 2 * n_pad * lane(feat) * 4           # x
                 + 2 * 2 * feat * lane(feat) * 4        # W1, W2
                 + 2 * 2 * 8 * lane(feat) * 4           # b1, b2
                 + 2 * tm * 128 * 4                     # w (lane padded)
                 + 2 * tm * lane(feat) * 4              # out
                 + n_pad * lane(n_pad) * 2              # adj_bf temp
                 + 4 * n_pad * lane(feat) * 4)          # s1 / feat1 / s2 / casts
    # Cap at 48 MiB so v7x's 64 MiB physical VMEM keeps headroom for compiler
    # scratch; this workload only needs a few MiB anyway.
    vmem_limit = int(min(48 * 1024 * 1024, max(32 * 1024 * 1024, 2 * footprint)))

    flops_tile = (2 * n_pad * feat * feat          # x @ W1
                  + 2 * n_pad * n_pad * feat       # adj @ support1
                  + 2 * n_pad * feat * feat        # feat1 @ W2
                  + 2 * tm * n_pad * feat)         # adj[rows] @ support2
    bytes_accessed = (n_pad * n_pad * 4 + n_pad * feat * 4 + 2 * feat * feat * 4
                      + 2 * feat * 4 + n_pad * 4 + n_pad * feat * 4)

    out = pl.pallas_call(
        _gcn_fused_kernel,
        out_shape=jax.ShapeDtypeStruct((n_pad, feat), jnp.float32),
        grid_spec=pltpu.PrefetchScalarGridSpec(
            num_scalar_prefetch=0,
            grid=(num_tiles,),
            in_specs=in_specs,
            out_specs=out_spec,
        ),
        compiler_params=pltpu.CompilerParams(
            dimension_semantics=("parallel",),
            vmem_limit_bytes=vmem_limit),
        cost_estimate=pl.CostEstimate(flops=num_tiles * flops_tile,
                                      transcendentals=0,
                                      bytes_accessed=int(bytes_accessed)),
    )(adj, x, w1, b1, w2, b2, w_pad)

    if pad:
        out = out[:n]
    return out, w   # `w` passthrough returned from the wrapper, not the kernel.


def init_gc_params(key, in_features, out_features):
    """Mirror GraphConvolution.reset_parameters: U(-stdv, stdv), stdv = 1/sqrt(out)."""
    stdv = 1.0 / math.sqrt(out_features)
    kw, kb = jax.random.split(key)
    weight = jax.random.uniform(kw, (in_features, out_features),
                                minval=-stdv, maxval=stdv, dtype=jnp.float32)
    bias = jax.random.uniform(kb, (1, out_features),
                              minval=-stdv, maxval=stdv, dtype=jnp.float32)
    return weight, bias


def reference_forward_f32(x, w, adj, w1, b1, w2, b2):
    feat_1 = jnp.maximum(adj @ (x @ w1) + b1, 0.0)
    emb = adj @ (feat_1 @ w2) + b2
    return emb * w, w


def reference_forward_bf16(x, w, adj, w1, b1, w2, b2):
    """Mirrors the kernel math: bf16 MXU operands, f32 acc, PyTorch contraction order."""
    bf = jnp.bfloat16
    adj_b = adj.astype(bf)
    s1 = jnp.dot(x.astype(bf), w1.astype(bf), preferred_element_type=jnp.float32)
    feat1 = jnp.maximum(
        jnp.dot(adj_b, s1.astype(bf), preferred_element_type=jnp.float32) + b1, 0.0)
    s2 = jnp.dot(feat1.astype(bf), w2.astype(bf), preferred_element_type=jnp.float32)
    emb = jnp.dot(adj_b, s2.astype(bf), preferred_element_type=jnp.float32) + b2
    return emb * w, w


if __name__ == "__main__":
    nproposal = 200    # N (node / proposal count; exercises padding 200 -> 208)
    nfeat = 128        # F (lane-dense feature width)

    key = jax.random.PRNGKey(0)
    kx, kw, kadj, k1, k2 = jax.random.split(key, 5)

    x = jax.random.normal(kx, (nproposal, nfeat), dtype=jnp.float32)
    w = jax.random.uniform(kw, (nproposal, 1), dtype=jnp.float32)
    adj_raw = jax.random.uniform(kadj, (nproposal, nproposal), dtype=jnp.float32)
    adj = adj_raw / jnp.sum(adj_raw, axis=-1, keepdims=True)   # row-normalized adjacency

    W1, b1 = init_gc_params(k1, nfeat, nfeat)   # conv_1
    W2, b2 = init_gc_params(k2, nfeat, nfeat)   # emb
    # Note: GCN.weight = GraphConvolution(1, 1) is unused in forward; omitted.

    out, w_out = gcn_forward(x, w, adj, W1, b1, W2, b2)
    jax.block_until_ready((out, w_out))

    assert out.shape == (nproposal, nfeat) and out.dtype == jnp.float32

    ref_bf, _ = reference_forward_bf16(x, w, adj, W1, b1, W2, b2)
    ref_f32, _ = reference_forward_f32(x, w, adj, W1, b1, W2, b2)

    # Primary check: matches the bf16-operand / f32-accumulate math (difference
    # is only MXU vs XLA reduction order).
    assert jnp.allclose(out, ref_bf, atol=2e-3, rtol=1e-2), \
        float(jnp.max(jnp.abs(out - ref_bf)))
    # Sanity check: close to the pure-f32 PyTorch semantics.
    assert jnp.allclose(out, ref_f32, atol=5e-2, rtol=5e-2), \
        float(jnp.max(jnp.abs(out - ref_f32)))
    assert jnp.array_equal(w_out, w)

    print("KERNEL_OK")
</pallas_src>

<mosaic_0001>
module attributes {stable_mosaic.version = 11 : i64} {
  func.func @_gcn_fused_kernel(%arg0: i32, %arg1: memref<208x208xf32, #tpu.memory_space<vmem>>, %arg2: memref<208x128xf32, #tpu.memory_space<vmem>>, %arg3: memref<128x128xf32, #tpu.memory_space<vmem>>, %arg4: memref<1x128xf32, #tpu.memory_space<vmem>>, %arg5: memref<128x128xf32, #tpu.memory_space<vmem>>, %arg6: memref<1x128xf32, #tpu.memory_space<vmem>>, %arg7: memref<104x1xf32, #tpu.memory_space<vmem>>, %arg8: memref<104x128xf32, #tpu.memory_space<vmem>>) attributes {dimension_semantics = [#tpu.dimension_semantics<parallel>], iteration_bounds = array<i64: 2>, scalar_prefetch = 0 : i64, scratch_operands = 0 : i64, tpu.core_type = #tpu.core_type<tc>, window_params = [{pipeline_mode = #tpu.pipeline_mode<synchronous>, transform_indices = @transform_0, window_bounds = array<i64: 208, 208>}, {pipeline_mode = #tpu.pipeline_mode<synchronous>, transform_indices = @transform_1, window_bounds = array<i64: 208, 128>}, {pipeline_mode = #tpu.pipeline_mode<synchronous>, transform_indices = @transform_2, window_bounds = array<i64: 128, 128>}, {pipeline_mode = #tpu.pipeline_mode<synchronous>, transform_indices = @transform_3, window_bounds = array<i64: 1, 128>}, {pipeline_mode = #tpu.pipeline_mode<synchronous>, transform_indices = @transform_4, window_bounds = array<i64: 128, 128>}, {pipeline_mode = #tpu.pipeline_mode<synchronous>, transform_indices = @transform_5, window_bounds = array<i64: 1, 128>}, {transform_indices = @transform_6, window_bounds = array<i64: 104, 1>}, {transform_indices = @transform_7, window_bounds = array<i64: 104, 128>}]} {
    %c0 = arith.constant 0 : index
    %c0_0 = arith.constant 0 : index
    %0 = vector.load %arg1[%c0, %c0_0] : memref<208x208xf32, #tpu.memory_space<vmem>>, vector<208x208xf32>
    %1 = arith.truncf %0 : vector<208x208xf32> to vector<208x208xbf16>
    %c0_1 = arith.constant 0 : index
    %c0_2 = arith.constant 0 : index
    %2 = vector.load %arg2[%c0_1, %c0_2] : memref<208x128xf32, #tpu.memory_space<vmem>>, vector<208x128xf32>
    %3 = arith.truncf %2 : vector<208x128xf32> to vector<208x128xbf16>
    %c0_3 = arith.constant 0 : index
    %c0_4 = arith.constant 0 : index
    %4 = vector.load %arg3[%c0_3, %c0_4] : memref<128x128xf32, #tpu.memory_space<vmem>>, vector<128x128xf32>
    %5 = arith.truncf %4 : vector<128x128xf32> to vector<128x128xbf16>
    %c0_5 = arith.constant 0 : index
    %c0_6 = arith.constant 0 : index
    %6 = vector.load %arg5[%c0_5, %c0_6] : memref<128x128xf32, #tpu.memory_space<vmem>>, vector<128x128xf32>
    %7 = arith.truncf %6 : vector<128x128xf32> to vector<128x128xbf16>
    %cst = arith.constant dense<0.000000e+00> : vector<208x128xf32>
    %8 = tpu.matmul %3, %5, %cst {dimension_numbers = #tpu.dot_dimension_numbers<[1], [0], [0], [1], [0, 0, 1, 1], [], []>} : vector<208x128xbf16>, vector<128x128xbf16>, vector<208x128xf32> -> vector<208x128xf32>
    %9 = arith.truncf %8 : vector<208x128xf32> to vector<208x128xbf16>
    %cst_7 = arith.constant dense<0.000000e+00> : vector<208x128xf32>
    %10 = tpu.matmul %1, %9, %cst_7 {dimension_numbers = #tpu.dot_dimension_numbers<[1], [0], [0], [1], [0, 0, 1, 1], [], []>} : vector<208x208xbf16>, vector<208x128xbf16>, vector<208x128xf32> -> vector<208x128xf32>
    %c0_8 = arith.constant 0 : index
    %c0_9 = arith.constant 0 : index
    %11 = vector.load %arg4[%c0_8, %c0_9] : memref<1x128xf32, #tpu.memory_space<vmem>>, vector<1x128xf32>
    %12 = vector.broadcast %11 : vector<1x128xf32> to vector<208x128xf32>
    %13 = arith.addf %10, %12 : vector<208x128xf32>
    %cst_10 = arith.constant 0.000000e+00 : f32
    %14 = vector.broadcast %cst_10 : f32 to vector<208x128xf32>
    %15 = arith.maximumf %13, %14 : vector<208x128xf32>
    %16 = arith.truncf %15 : vector<208x128xf32> to vector<208x128xbf16>
    %cst_11 = arith.constant dense<0.000000e+00> : vector<208x128xf32>
    %17 = tpu.matmul %16, %7, %cst_11 {dimension_numbers = #tpu.dot_dimension_numbers<[1], [0], [0], [1], [0, 0, 1, 1], [], []>} : vector<208x128xbf16>, vector<128x128xbf16>, vector<208x128xf32> -> vector<208x128xf32>
    %c104_i32 = arith.constant 104 : i32
    %18 = arith.muli %arg0, %c104_i32 : i32
    %19 = tpu.assume_multiple %18, 8 : i32
    %20 = arith.index_cast %19 : i32 to index
    %c0_12 = arith.constant 0 : index
    %21 = vector.load %arg1[%20, %c0_12] : memref<208x208xf32, #tpu.memory_space<vmem>>, vector<104x208xf32>
    %22 = arith.truncf %21 : vector<104x208xf32> to vector<104x208xbf16>
    %23 = arith.truncf %17 : vector<208x128xf32> to vector<208x128xbf16>
    %cst_13 = arith.constant dense<0.000000e+00> : vector<104x128xf32>
    %24 = tpu.matmul %22, %23, %cst_13 {dimension_numbers = #tpu.dot_dimension_numbers<[1], [0], [0], [1], [0, 0, 1, 1], [], []>} : vector<104x208xbf16>, vector<208x128xbf16>, vector<104x128xf32> -> vector<104x128xf32>
    %c0_14 = arith.constant 0 : index
    %c0_15 = arith.constant 0 : index
    %25 = vector.load %arg6[%c0_14, %c0_15] : memref<1x128xf32, #tpu.memory_space<vmem>>, vector<1x128xf32>
    %26 = vector.broadcast %25 : vector<1x128xf32> to vector<104x128xf32>
    %27 = arith.addf %24, %26 : vector<104x128xf32>
    %c0_16 = arith.constant 0 : index
    %c0_17 = arith.constant 0 : index
    %28 = vector.load %arg7[%c0_16, %c0_17] : memref<104x1xf32, #tpu.memory_space<vmem>>, vector<104x1xf32>
    %29 = vector.broadcast %28 : vector<104x1xf32> to vector<104x128xf32>
    %30 = arith.mulf %27, %29 : vector<104x128xf32>
    %c0_18 = arith.constant 0 : index
    %c0_19 = arith.constant 0 : index
    %31 = vector.load %arg8[%c0_18, %c0_19] : memref<104x128xf32, #tpu.memory_space<vmem>>, vector<104x128xf32>
    tpu.vector_store %arg8[%c0_18, %c0_19], %30 {strides = array<i32>} : memref<104x128xf32, #tpu.memory_space<vmem>>, vector<104x128xf32>,
    return
  }
  func.func @transform_0(%arg0: i32) -> (i32, i32) {
    %c0_i32 = arith.constant 0 : i32
    %c0_i32_0 = arith.constant 0 : i32
    %c0_i32_1 = arith.constant 0 : i32
    return %c0_i32, %c0_i32_0 : i32, i32
  }
  func.func @transform_1(%arg0: i32) -> (i32, i32) {
    %c0_i32 = arith.constant 0 : i32
    %c0_i32_0 = arith.constant 0 : i32
    %c0_i32_1 = arith.constant 0 : i32
    return %c0_i32, %c0_i32_0 : i32, i32
  }
  func.func @transform_2(%arg0: i32) -> (i32, i32) {
    %c0_i32 = arith.constant 0 : i32
    %c0_i32_0 = arith.constant 0 : i32
    %c0_i32_1 = arith.constant 0 : i32
    return %c0_i32, %c0_i32_0 : i32, i32
  }
  func.func @transform_3(%arg0: i32) -> (i32, i32) {
    %c0_i32 = arith.constant 0 : i32
    %c0_i32_0 = arith.constant 0 : i32
    %c0_i32_1 = arith.constant 0 : i32
    return %c0_i32, %c0_i32_0 : i32, i32
  }
  func.func @transform_4(%arg0: i32) -> (i32, i32) {
    %c0_i32 = arith.constant 0 : i32
    %c0_i32_0 = arith.constant 0 : i32
    %c0_i32_1 = arith.constant 0 : i32
    return %c0_i32, %c0_i32_0 : i32, i32
  }
  func.func @transform_5(%arg0: i32) -> (i32, i32) {
    %c0_i32 = arith.constant 0 : i32
    %c0_i32_0 = arith.constant 0 : i32
    %c0_i32_1 = arith.constant 0 : i32
    return %c0_i32, %c0_i32_0 : i32, i32
  }
  func.func @transform_6(%arg0: i32) -> (i32, i32) {
    %c0_i32 = arith.constant 0 : i32
    %c0_i32_0 = arith.constant 0 : i32
    return %arg0, %c0_i32 : i32, i32
  }
  func.func @transform_7(%arg0: i32) -> (i32, i32) {
    %c0_i32 = arith.constant 0 : i32
    %c0_i32_0 = arith.constant 0 : i32
    return %arg0, %c0_i32 : i32, i32
  }
}

</mosaic_0001>

<bundles_post_ra>
// kernel: tpu_custom_call.1
= control target key start
LH: loop header
LB: loop body
LE: loop exit
PB: predicated region body
PF: predicated region fallthrough
CT: control target
= control target key end

     0   :  { %12 = vsyncpa [#allocation3], 0  ;;  %s2403_s0 = inlined_call_operand.hbm [shape: f32[208,208], index: 0, kind: input, shape index: {}]   ;;  %s2404_s1 = inlined_call_operand.vmem [shape: f32[208,128], index: 1, kind: input, shape index: {}]   ;;  %s2405_s2 = inlined_call_operand.hbm [shape: f32[128,128], index: 2, kind: input, shape index: {}]   ;;  %s2406_s3 = inlined_call_operand.vmem [shape: f32[1,128], index: 3, kind: input, shape index: {}]   ;;  %s2407_s4 = inlined_call_operand.hbm [shape: f32[128,128], index: 4, kind: input, shape index: {}]   ;;  %s2408_s5 = inlined_call_operand.vmem [shape: f32[1,128], index: 5, kind: input, shape index: {}]   ;;  %s2409_s6 = inlined_call_operand.vmem [shape: f32[208,1], index: 6, kind: input, shape index: {}]   ;;  %s2410_s7 = inlined_call_operand.hbm [shape: f32[208,128], index: 7, kind: output, shape index: {}]  }
   0x1   :  { %13 = vsyncpa [#allocation6], 0 }
   0x2   :  { %14 = vsyncpa [#allocation4], 0 }
   0x3   :  { %16 = vsyncpa [#allocation4 + $0x1], 0  ;;  %s1889_s24 = smov 0   ;;  %s1891_s25 = smov 0  }
   0x4   :  { %s1893_s26 = smov 0   ;;  %s1895_s27 = smov 0  }
   0x5 LB: > { %s1910_s28 = sadd.s32 4294967295, %s1834_s27   ;;  %s1388_s29 = sadd.s32 4294967294, %s1834_s27   ;;  %s1834_s27 = sphi %s1895_s27, %s2418_s27   ;;  %s1830_s26 = sphi %s1893_s26, %s2417_s26   ;;  %s1826_s25 = sphi %s1891_s25, %s2416_s25   ;;  %s1822_s24 = sphi %s1889_s24, %s2415_s24  }
   0x6   : > { %s1914_s30 = sadd.s32 1, %s1834_s27   ;;  %s181_s8 = sadd.s32 1, %s1830_s26 }
   0x7   : > { %s178_s9 = ssub.s32 %s1834_s27, %s1914_s30  ;;  %p191_p0 = scmp.ne.s32.totalorder %s1830_s26, %s1826_s25 }
   0x8   : > { %p179_p1 = scmp.eq.s32.totalorder %s178_s9, 0  ;;  %p192_p2 = scmp.eq.s32.totalorder %s1910_s28, 1 }
   0x9   : > { %p197_p3 = scmp.ne.s32.totalorder %s1826_s25, %s1822_s24  ;;  %p198_p4 = scmp.eq.s32.totalorder %s1388_s29, 1 }
   0xa   : > { %s1925_s10 = scalar_select %p179_p1, %s1830_s26, %s181_s8  }
   0xb   : > { %p1927_p5 = por %p192_p2, %p191_p0  ;;  %p1931_p6 = por %p198_p4, %p197_p3 }
   0xc   : > { %p1389_p7 = scmp.ge.s32.totalorder %s1834_s27, 1  ;;  %p205_p8 = scmp.lt.s32.totalorder %s1834_s27, 3 }
   0xd   : > { %p1635_p9 = scmp.eq.s32.totalorder %s1910_s28, 0  ;;  %s1836_s14 = smov [#allocation5]  }
   0xe   : > { %p1938_p10 = pnand %p1389_p7, %p205_p8  ;;  %s233_s15 = sshll.u32 %s1836_s14, 4  ;;  %s234_s15 = int_to_ptr.vmem [resolvable:$true] %s233_s15 }
   0xf   : > { %s1837_s17 = smov [#allocation2]   ;;  %s1699_s19 = scalar_lea.vmem %s234_s15, 2048 }
  0x10   : > { %p1621_p11 = pneg %p1938_p10  ;;  %s217_s18 = sshll.u32 %s1837_s17, 4  ;;  %s218_s18 = int_to_ptr.vmem [resolvable:$true] %s217_s18 }
  0x11   : > { %p1700_p0 = scmp.ne.s32.totalorder %s234_s15, %s1699_s19  ;;  %p1707_p3 = scmp.lt.s32.totalorder %s234_s15, %s234_s15 }
  0x12   : > { %p1946_p12 = pnand %p1635_p9, %p1621_p11  ;;  %p1708_p4 = scmp.lt.s32.totalorder %s1699_s19, %s1699_s19 }
  0x14   : > { %p1690_p13 = pneg %p1946_p12  ;;  %p1709_p7 = por %p1708_p4, %p1707_p3 }
  0x16   : > { %p1702_p1 = pnand %p1700_p0, %p1690_p13 }
  0x18   : > { %p1703_p2 = pneg %p1702_p1 }
  0x1a   : > { %p1710_p8 = pnand %p1709_p7, %p1703_p2 }
  0x1c   : > { %1713 = shalt.err (!%p1710_p8)
}
  0x1d   : > { %s1838_s20 = smov 128   ;;  %s1839_s21 = smov 8  }
  0x1e   : > { %1627 = dma.hbm_to_vmem [thread:$0]  (!%p1946_p12), %s2405_s2, 2048, %s234_s15, [#allocation6], %s1838_s20, %s1838_s20, %s1839_s21  }
  0x1f   : > { %s1725_s29 = scalar_lea.vmem %s218_s18, 6656  ;;  %p1733_p2 = scmp.lt.s32.totalorder %s218_s18, %s218_s18 }
  0x20   : > { %p1726_p11 = scmp.ne.s32.totalorder %s218_s18, %s1725_s29  ;;  %p1734_p3 = scmp.lt.s32.totalorder %s1725_s29, %s1725_s29 }
  0x22   : > { %p1728_p0 = pnand %p1726_p11, %p1690_p13  ;;  %p1735_p4 = por %p1734_p3, %p1733_p2 }
  0x24   : > { %p1729_p1 = pneg %p1728_p0 }
  0x26   : > { %p1736_p7 = pnand %p1735_p4, %p1729_p1 }
  0x28   : > { %1739 = shalt.err (!%p1736_p7)
}
  0x29   : > { %s1840_s8 = smov 256   ;;  %s1841_s9 = smov 16  }
  0x2a   : > { %1624 = dma.hbm_to_vmem [thread:$0]  (!%p1946_p12), %s2403_s0, 6656, %s218_s18, [#allocation3], %s1840_s8, %s1840_s8, %s1841_s9  }
  0x2b   : > { %s1842_s15 = smov [#allocation7]  }
  0x2c   : > { %s249_s19 = sshll.u32 %s1842_s15, 4  ;;  %s250_s19 = int_to_ptr.vmem [resolvable:$true] %s249_s19 }
  0x2d   : > { %s1751_s22 = scalar_lea.vmem %s250_s19, 2048  ;;  %p1759_p1 = scmp.lt.s32.totalorder %s250_s19, %s250_s19 }
  0x2e   : > { %p1752_p8 = scmp.ne.s32.totalorder %s250_s19, %s1751_s22  ;;  %p1760_p2 = scmp.lt.s32.totalorder %s1751_s22, %s1751_s22 }
  0x30   : > { %p1754_p11 = pnand %p1752_p8, %p1690_p13  ;;  %p1761_p3 = por %p1760_p2, %p1759_p1 }
  0x32   : > { %p1755_p0 = pneg %p1754_p11 }
  0x34   : > { %p1762_p4 = pnand %p1761_p3, %p1755_p0 }
  0x36   : > { %1765 = shalt.err (!%p1762_p4)
}
  0x37   : > { %1630 = dma.hbm_to_vmem [thread:$0]  (!%p1946_p12), %s2407_s4, 2048, %s250_s19, [#allocation6], %s1838_s20, %s1838_s20, %s1839_s21  }
  0x38   : > { %277 = sbr.rel (%p1938_p10) target bundleno = 1189 (0x4a5), region = 48 }
  0x3d   : > { %1809 = dma.done.wait (%p1635_p9), [#allocation3], 6656  }
  0x3e   : > { %1811 = vsyncadd (%p1635_p9), [#allocation3], 4294960640 }
  0x3f   : > { %1813 = dma.done.wait (%p1635_p9), [#allocation6], 4096  }
  0x40   : > { %1815 = vsyncadd (%p1635_p9), [#allocation6], 4294963200  ;;  %v1843_v0 = vmov 0.0   ;;  %vm1844_vm0 = vmmov 0   ;;  %v456_v1 = vld [vmem:[#allocation5 + $0x70] sm:$0xff]  ;;  %v457_v2 = vld [vmem:[#allocation5 + $0x78] sm:$0xff] }
  0x41   : > { %1470 = vmatprep.subr.bf16.mxu0 %v1843_v0  ;;  %1486 = vmatprep.mubr.msk.bf16.mxu0 %vm1844_vm0, %v1843_v0  ;;  %v454_v3 = vld [vmem:[#allocation5 + $0x60] sm:$0xff]  ;;  %v465_v4 = vpack.c.bf16 %v457_v2, %v456_v1  ;;  %v455_v5 = vld [vmem:[#allocation5 + $0x68] sm:$0xff]  ;;  %v452_v7 = vld [vmem:[#allocation5 + $0x50] sm:$0xff]  ;;  %v1845_v1 = vmov 0   ;;  %vm647_vm1 = vcmask 654336   ;;  %s1000_s18 = smul.u32 104, %s1910_s28 }
  0x42   : > { %v464_v6 = vpack.c.bf16 %v455_v5, %v454_v3  ;;  %v453_v8 = vld [vmem:[#allocation5 + $0x58] sm:$0xff]  ;;  %v450_v10 = vld [vmem:[#allocation5 + $0x40] sm:$0xff]  ;;  %v451_v11 = vld [vmem:[#allocation5 + $0x48] sm:$0xff]  ;;  %687 = vmatprep.subr.bf16.mxu1 %v1845_v1  ;;  %1686 = vset.pattern.permute.xlu0 %v1845_v1  ;;  %s317_s20 = smul.u32 13, %s1910_s28  ;;  %s314_s14 = sand.u32 1, %s1826_s25  }
  0x43   : > { %1471 = vmatpush3.bf16.msra.mxu0 %v465_v4  ;;  %v463_v9 = vpack.c.bf16 %v453_v8, %v452_v7  ;;  %v462_v12 = vpack.c.bf16 %v451_v11, %v450_v10  ;;  %v448_v13 = vld [vmem:[#allocation5 + $0x30] sm:$0xff]  ;;  %v449_v14 = vld [vmem:[#allocation5 + $0x38] sm:$0xff]  ;;  %v446_v16 = vld [vmem:[#allocation5 + $0x20] sm:$0xff]  ;;  %1687 = vset.pattern.permute.xlu1 %v1845_v1  ;;  %s1001_s23 = sshra.s32 %s1000_s18, 3  ;;  %s1606_s19 = smul.u32 104, %s314_s14 }
  0x44   : > { %1472 = vmatprep.subr.bf16.mxu0 %v1843_v0  ;;  %v461_v15 = vpack.c.bf16 %v449_v14, %v448_v13  ;;  %v447_v17 = vld [vmem:[#allocation5 + $0x28] sm:$0xff]  ;;  %v444_v19 = vld [vmem:[#allocation5 + $0x10] sm:$0xff]  ;;  %v445_v20 = vld [vmem:[#allocation5 + $0x18] sm:$0xff]  ;;  %s1426_s13 = sshll.u32 %s1001_s23, 4  ;;  %p318_p9 = scmp.lt.s32.totalorder %s317_s20, 25 }
  0x45   : > { %v460_v18 = vpack.c.bf16 %v447_v17, %v446_v16  ;;  %v459_v21 = vpack.c.bf16 %v445_v20, %v444_v19  ;;  %v442_v22 = vld [vmem:[#allocation5] sm:$0xff]  ;;  %v443_v23 = vld [vmem:[#allocation5 + $0x8] sm:$0xff]  ;;  %v405_v28 = vld [vmem:[%s2404_s1 + $0x10] sm:$0xff]  ;;  %s2217_s16 = scalar_lea.vmem [#allocation2], %s1426_s13  ;;  %s2326_s22 = scalar_lea.vmem [#allocation8], %s1606_s19 }
  0x46   : > { %v458_v24 = vpack.c.bf16 %v443_v23, %v442_v22  ;;  %v403_v25 = vld [vmem:[%s2404_s1] sm:$0xff]  ;;  %v404_v26 = vld [vmem:[%s2404_s1 + $0x8] sm:$0xff]  ;;  %v406_v29 = vld [vmem:[%s2404_s1 + $0x18] sm:$0xff]  ;;  %s2420_s20 = smov (!%p318_p9, %s317_s20), 25  ;;  %s1427_s18 = smul.u32 1664, %s1910_s28 }
  0x47   : > { %1473 = vmatpush3.bf16.msra.mxu0 %v464_v6  ;;  %v429_v27 = vpack.c.bf16 %v404_v26, %v403_v25  ;;  %v430_v30 = vpack.c.bf16 %v406_v29, %v405_v28  ;;  %v407_v31 = vld [vmem:[%s2404_s1 + $0x20] sm:$0xff]  ;;  %v408_v32 = vld [vmem:[%s2404_s1 + $0x28] sm:$0xff]  ;;  %v409_v34 = vld [vmem:[%s2404_s1 + $0x30] sm:$0xff]  ;;  %s1398_s21 = sshll.u32 %s2420_s20, 3  ;;  %s1293_s23 = sshll.u32 %s2326_s22, 4  ;;  %s2358_s23 = int_to_ptr.vmem [resolvable:$true] %s1293_s23 }
  0x48   : > { %1474 = vmatprep.subr.bf16.mxu0 %v1843_v0  ;;  %v431_v33 = vpack.c.bf16 %v408_v32, %v407_v31  ;;  %v410_v35 = vld [vmem:[%s2404_s1 + $0x38] sm:$0xff]  ;;  %v411_v37 = vld [vmem:[%s2404_s1 + $0x40] sm:$0xff]  ;;  %v412_v38 = vld [vmem:[%s2404_s1 + $0x48] sm:$0xff]  ;;  %s2246_s9 = scalar_lea.vmem %s2409_s6, %s1398_s21  ;;  %s2356_s20 = scalar_lea.hbm %s2410_s7, %s1427_s18 }
  0x49   : > { %v432_v36 = vpack.c.bf16 %v410_v35, %v409_v34  ;;  %v433_v39 = vpack.c.bf16 %v412_v38, %v411_v37  ;;  %v413_v40 = vld [vmem:[%s2404_s1 + $0x50] sm:$0xff]  ;;  %v414_v41 = vld [vmem:[%s2404_s1 + $0x58] sm:$0xff]  ;;  %v415_v43 = vld [vmem:[%s2404_s1 + $0x60] sm:$0xff]  ;;  %s2363_s28 = scalar_lea.sflag [#allocation4], %s314_s14  ;;  %s1766_s21 = scalar_lea.vmem %s2358_s23, 1664 }
  0x4a   : > { %v434_v42 = vpack.c.bf16 %v414_v41, %v413_v40  ;;  %v416_v44 = vld [vmem:[%s2404_s1 + $0x68] sm:$0xff]  ;;  %v417_v46 = vld [vmem:[%s2404_s1 + $0x70] sm:$0xff]  ;;  %v418_v47 = vld [vmem:[%s2404_s1 + $0x78] sm:$0xff]  ;;  %p1767_p10 = scmp.ne.s32.totalorder %s2358_s23, %s1766_s21  ;;  %s1846_s29 = smov [#allocation8]  }
  0x4b   : > { %1475 = vmatpush3.bf16.msra.mxu0 %v463_v9  ;;  %v435_v45 = vpack.c.bf16 %v416_v44, %v415_v43  ;;  %v436_v48 = vpack.c.bf16 %v418_v47, %v417_v46  ;;  %v419_v49 = vld [vmem:[%s2404_s1 + $0x80] sm:$0xff]  ;;  %v420_v50 = vld [vmem:[%s2404_s1 + $0x88] sm:$0xff]  ;;  %v421_v52 = vld [vmem:[%s2404_s1 + $0x90] sm:$0xff]  ;;  %s1770_s8 = sshll.u32 %s1846_s29, 4  ;;  %s1771_s8 = int_to_ptr.vmem [resolvable:$false] %s1770_s8 }
  0x4c   : > { %1476 = vmatprep.subr.bf16.mxu0 %v1843_v0  ;;  %v437_v51 = vpack.c.bf16 %v420_v50, %v419_v49  ;;  %v422_v53 = vld [vmem:[%s2404_s1 + $0x98] sm:$0xff]  ;;  %v423_v55 = vld [vmem:[%s2404_s1 + $0xa0] sm:$0xff]  ;;  %v424_v56 = vld [vmem:[%s2404_s1 + $0xa8] sm:$0xff]  ;;  %p1768_p12 = pnand %p1767_p10, %p1927_p5  ;;  %p1773_p7 = scmp.lt.s32.totalorder %s2358_s23, %s1771_s8 }
  0x4d   : > { %v438_v54 = vpack.c.bf16 %v422_v53, %v421_v52  ;;  %v439_v57 = vpack.c.bf16 %v424_v56, %v423_v55  ;;  %v425_v58 = vld [vmem:[%s2404_s1 + $0xb0] sm:$0xff]  ;;  %v426_v59 = vld [vmem:[%s2404_s1 + $0xb8] sm:$0xff]  ;;  %v427_v61 = vld [vmem:[%s2404_s1 + $0xc0] sm:$0xff] }
  0x4e   : > { %v440_v60 = vpack.c.bf16 %v426_v59, %v425_v58  ;;  %v428_v62 = vld [vmem:[%s2404_s1 + $0xc8] sm:$0xff]  ;;  %v328_v3 = vld [vmem:[#allocation2 + $0x18] sm:$0xff]  ;;  %v480_v59 = vld [vmem:[#allocation7 + $0x70] sm:$0xff]  ;;  %p1769_p13 = pneg %p1768_p12 }
  0x4f   : > { %1477 = vmatpush3.bf16.msra.mxu0 %v462_v12  ;;  %v441_v63 = vpack.c.bf16 %v428_v62, %v427_v61  ;;  %v326_v2 = vld [vmem:[#allocation2 + $0x8] sm:$0xff]  ;;  %v478_v61 = vld [vmem:[#allocation7 + $0x60] sm:$0xff] }
  0x50   : > { %1478 = vmatprep.subr.bf16.mxu0 %v1843_v0  ;;  %v378_v4 = vpack.c.bf16 %v328_v3, %v326_v2 }
  0x52   : > { %1400 = vmatprep.mubr.msk.bf16.mxu1 %vm647_vm1, %v378_v4 }
  0x53   : > { %1479 = vmatpush3.bf16.msra.mxu0 %v461_v15 }
  0x54   : > { %1480 = vmatprep.subr.bf16.mxu0 %v1843_v0 }
  0x57   : > { %1481 = vmatpush3.bf16.msra.mxu0 %v460_v18 }
  0x58   : > { %1482 = vmatprep.subr.bf16.mxu0 %v1843_v0 }
  0x5b   : > { %1483 = vmatpush3.bf16.msra.mxu0 %v459_v21 }
  0x5c   : > { %1484 = vmatprep.subr.bf16.mxu0 %v1843_v0 }
  0x5f   : > { %1485 = vmatpush3.bf16.msra.mxu0 %v458_v24 }
  0x60   : > { %1538 = vmatprep.subr.bf16.mxu0 %v1843_v0 }
  0x62   : > { %1487 = vmatmul.mubr.bf16.vlgmr.msra.gmra.mxu0 %v429_v27 }
  0x63   : > { %1490 = vmatprep.mubr.msk.bf16.mxu0 %vm1844_vm0, %v1843_v0 }
  0x6a   : > { %1491 = vmatmul.mubr.bf16.gmra.mxu0 %v430_v30 }
  0x6b   : > { %1494 = vmatprep.mubr.msk.bf16.mxu0 %vm1844_vm0, %v1843_v0 }
  0x72   : > { %1495 = vmatmul.mubr.bf16.gmra.mxu0 %v431_v33 }
  0x73   : > { %1498 = vmatprep.mubr.msk.bf16.mxu0 %vm1844_vm0, %v1843_v0 }
  0x7a   : > { %1499 = vmatmul.mubr.bf16.gmra.mxu0 %v432_v36 }
  0x7b   : > { %1502 = vmatprep.mubr.msk.bf16.mxu0 %vm1844_vm0, %v1843_v0 }
  0x82   : > { %1503 = vmatmul.mubr.bf16.gmra.mxu0 %v433_v39 }
  0x83   : > { %1506 = vmatprep.mubr.msk.bf16.mxu0 %vm1844_vm0, %v1843_v0 }
  0x8a   : > { %1507 = vmatmul.mubr.bf16.gmra.mxu0 %v434_v42 }
  0x8b   : > { %1510 = vmatprep.mubr.msk.bf16.mxu0 %vm1844_vm0, %v1843_v0 }
  0x92   : > { %1511 = vmatmul.mubr.bf16.gmra.mxu0 %v435_v45 }
  0x93   : > { %1514 = vmatprep.mubr.msk.bf16.mxu0 %vm1844_vm0, %v1843_v0 }
  0x9a   : > { %1515 = vmatmul.mubr.bf16.gmra.mxu0 %v436_v48 }
  0x9b   : > { %1518 = vmatprep.mubr.msk.bf16.mxu0 %vm1844_vm0, %v1843_v0 }
  0xa2   : > { %1519 = vmatmul.mubr.bf16.gmra.mxu0 %v437_v51 }
  0xa3   : > { %1522 = vmatprep.mubr.msk.bf16.mxu0 %vm1844_vm0, %v1843_v0 }
  0xaa   : > { %1523 = vmatmul.mubr.bf16.gmra.mxu0 %v438_v54 }
  0xab   : > { %1526 = vmatprep.mubr.msk.bf16.mxu0 %vm1844_vm0, %v1843_v0 }
  0xb2   : > { %1527 = vmatmul.mubr.bf16.gmra.mxu0 %v439_v57 }
  0xb3   : > { %1530 = vmatprep.mubr.msk.bf16.mxu0 %vm1844_vm0, %v1843_v0 }
  0xba   : > { %1531 = vmatmul.mubr.bf16.gmra.mxu0 %v440_v60  ;;  %v481_v60 = vld [vmem:[#allocation7 + $0x78] sm:$0xff] }
  0xbb   : > { %1534 = vmatprep.mubr.msk.bf16.mxu0 %vm1844_vm0, %v1843_v0  ;;  %v489_v62 = vpack.c.bf16 %v481_v60, %v480_v59  ;;  %v349_v59 = vld [vmem:[#allocation2 + $0xc0] sm:$0xff]  ;;  %v351_v60 = vld [vmem:[#allocation2 + $0xd0] sm:$0xff] }
  0xbd   : > { %1539 = vmatpush3.bf16.msra.mxu0 %v489_v62  ;;  %v356_v62 = vld [vmem:[#allocation2 + $0xf8] sm:$0xff] }
  0xbe   : > { %1540 = vmatprep.subr.bf16.mxu0 %v1843_v0 }
  0xc2   : > { %1535 = vmatmul.mubr.bf16.gmra.mxu0 %v441_v63  ;;  %v479_v63 = vld [vmem:[#allocation7 + $0x68] sm:$0xff] }
  0xc3   : > { %1554 = vmatprep.mubr.msk.bf16.mxu0 %vm1844_vm0, %v1843_v0  ;;  %v488_v3 = vpack.c.bf16 %v479_v63, %v478_v61  ;;  %v354_v61 = vld [vmem:[#allocation2 + $0xe8] sm:$0xff]  ;;  %v389_v63 = vpack.c.bf16 %v351_v60, %v349_v59 }
  0xc5   : > { %1541 = vmatpush3.bf16.msra.mxu0 %v488_v3  ;;  %v353_v3 = vld [vmem:[#allocation2 + $0xe0] sm:$0xff] }
  0xc6   : > { %1542 = vmatprep.subr.bf16.mxu0 %v1843_v0 }
 0x122   : > { %v2111_v5 = vpop.f32.mrf.mxu0 }
 0x124   : > { %v1488_v6 = vpop.f32.mrf.mxu0 }
 0x125   : > { %v476_v6 = vld [vmem:[#allocation7 + $0x50] sm:$0xff] }
 0x126   : > { %v2113_v7 = vpop.f32.mrf.mxu0 }
 0x127   : > { %v627_v8 = vpack.c.bf16 %v2113_v7, %v2111_v5  ;;  %v474_v5 = vld [vmem:[#allocation7 + $0x40] sm:$0xff]  ;;  %v475_v7 = vld [vmem:[#allocation7 + $0x48] sm:$0xff] }
 0x128   : > { %v1489_v9 = vpop.f32.mrf.mxu0 }
 0x129   : > { %v477_v9 = vld [vmem:[#allocation7 + $0x58] sm:$0xff] }
 0x12a   : > { %v532_v10 = vpop.f32.mrf.mxu0 }
 0x12c   : > { %v1492_v11 = vpop.f32.mrf.mxu0 }
 0x12d   : > { %v487_v11 = vpack.c.bf16 %v477_v9, %v476_v6  ;;  %v358_v6 = vld [vmem:[#allocation2 + $0x108] sm:$0xff]  ;;  %v360_v9 = vld [vmem:[#allocation2 + $0x118] sm:$0xff] }
 0x12e   : > { %v535_v12 = vpop.f32.mrf.mxu0 }
 0x12f   : > { %v628_v13 = vpack.c.bf16 %v535_v12, %v532_v10  ;;  %1543 = vmatpush3.bf16.msra.mxu0 %v487_v11  ;;  %v394_v11 = vpack.c.bf16 %v360_v9, %v358_v6 }
 0x130   : > { %v1493_v14 = vpop.f32.mrf.mxu0  ;;  %1544 = vmatprep.subr.bf16.mxu0 %v1843_v0 }
 0x131   : > { %v486_v14 = vpack.c.bf16 %v475_v7, %v474_v5  ;;  %v359_v5 = vld [vmem:[#allocation2 + $0x110] sm:$0xff]  ;;  %v362_v7 = vld [vmem:[#allocation2 + $0x128] sm:$0xff] }
 0x132   : > { %v540_v15 = vpop.f32.mrf.mxu0 }
 0x133   : > { %1545 = vmatpush3.bf16.msra.mxu0 %v486_v14 }
 0x134   : > { %v1496_v16 = vpop.f32.mrf.mxu0  ;;  %1546 = vmatprep.subr.bf16.mxu0 %v1843_v0 }
 0x135   : > { %v472_v16 = vld [vmem:[#allocation7 + $0x30] sm:$0xff] }
 0x136   : > { %v543_v17 = vpop.f32.mrf.mxu0 }
 0x137   : > { %v629_v53 = vpack.c.bf16 %v543_v17, %v540_v15  ;;  %v473_v17 = vld [vmem:[#allocation7 + $0x38] sm:$0xff] }
 0x138   : > { %v1497_v18 = vpop.f32.mrf.mxu0 }
 0x13a   : > { %v548_v19 = vpop.f32.mrf.mxu0 }
 0x13c   : > { %v1500_v20 = vpop.f32.mrf.mxu0 }
 0x13e   : > { %v551_v21 = vpop.f32.mrf.mxu0 }
 0x13f   : > { %v630_v50 = vpack.c.bf16 %v551_v21, %v548_v19  ;;  %v485_v19 = vpack.c.bf16 %v473_v17, %v472_v16  ;;  %v471_v16 = vld [vmem:[#allocation7 + $0x28] sm:$0xff] }
 0x140   : > { %v1501_v22 = vpop.f32.mrf.mxu0 }
 0x141   : > { %1547 = vmatpush3.bf16.msra.mxu0 %v485_v19  ;;  %v325_v22 = vld [vmem:[#allocation2] sm:$0xff]  ;;  %v363_v19 = vld [vmem:[#allocation2 + $0x130] sm:$0xff] }
 0x142   : > { %v556_v23 = vpop.f32.mrf.mxu0  ;;  %1548 = vmatprep.subr.bf16.mxu0 %v1843_v0 }
 0x144   : > { %v1504_v24 = vpop.f32.mrf.mxu0 }
 0x145   : > { %v330_v24 = vld [vmem:[#allocation2 + $0x28] sm:$0xff] }
 0x146   : > { %v559_v25 = vpop.f32.mrf.mxu0 }
 0x147   : > { %v631_v47 = vpack.c.bf16 %v559_v25, %v556_v23  ;;  %v327_v23 = vld [vmem:[#allocation2 + $0x10] sm:$0xff]  ;;  %v332_v25 = vld [vmem:[#allocation2 + $0x38] sm:$0xff] }
 0x148   : > { %v1505_v26 = vpop.f32.mrf.mxu0 }
 0x14a   : > { %v564_v27 = vpop.f32.mrf.mxu0 }
 0x14c   : > { %v1508_v28 = vpop.f32.mrf.mxu0 }
 0x14d   : > { %v380_v28 = vpack.c.bf16 %v332_v25, %v330_v24 }
 0x14e   : > { %v567_v29 = vpop.f32.mrf.mxu0 }
 0x14f   : > { %v632_v44 = vpack.c.bf16 %v567_v29, %v564_v27  ;;  %v377_v27 = vpack.c.bf16 %v327_v23, %v325_v22  ;;  %v329_v29 = vld [vmem:[#allocation2 + $0x20] sm:$0xff]  ;;  %v366_v22 = vld [vmem:[#allocation2 + $0x148] sm:$0xff]  ;;  %v368_v23 = vld [vmem:[#allocation2 + $0x158] sm:$0xff] }
 0x150   : > { %v1509_v30 = vpop.f32.mrf.mxu0 }
 0x151   : > { %v331_v30 = vld [vmem:[#allocation2 + $0x30] sm:$0xff] }
 0x152   : > { %v572_v31 = vpop.f32.mrf.mxu0 }
 0x154   : > { %v1512_v32 = vpop.f32.mrf.mxu0 }
 0x155   : > { %v336_v32 = vld [vmem:[#allocation2 + $0x58] sm:$0xff] }
 0x156   : > { %v575_v33 = vpop.f32.mrf.mxu0 }
 0x157   : > { %v633_v41 = vpack.c.bf16 %v575_v33, %v572_v31  ;;  %v334_v31 = vld [vmem:[#allocation2 + $0x48] sm:$0xff]  ;;  %v379_v33 = vpack.c.bf16 %v331_v30, %v329_v29  ;;  %v365_v30 = vld [vmem:[#allocation2 + $0x140] sm:$0xff] }
 0x158   : > { %v1513_v34 = vpop.f32.mrf.mxu0 }
 0x159   : > { %v382_v34 = vpack.c.bf16 %v336_v32, %v334_v31  ;;  %v367_v31 = vld [vmem:[#allocation2 + $0x150] sm:$0xff]  ;;  %v370_v32 = vld [vmem:[#allocation2 + $0x168] sm:$0xff] }
 0x15a   : > { %v580_v35 = vpop.f32.mrf.mxu0 }
 0x15c   : > { %v1516_v36 = vpop.f32.mrf.mxu0 }
 0x15d   : > { %v335_v36 = vld [vmem:[#allocation2 + $0x50] sm:$0xff] }
 0x15e   : > { %v583_v37 = vpop.f32.mrf.mxu0 }
 0x15f   : > { %v634_v38 = vpack.c.bf16 %v583_v37, %v580_v35  ;;  %v333_v35 = vld [vmem:[#allocation2 + $0x40] sm:$0xff]  ;;  %v338_v37 = vld [vmem:[#allocation2 + $0x68] sm:$0xff] }
 0x160   : > { %v1517_v39 = vpop.f32.mrf.mxu0 }
 0x161   : > { %688 = vmatpush1.bf16.msra.mxu1 %v634_v38  ;;  %v340_v38 = vld [vmem:[#allocation2 + $0x78] sm:$0xff]  ;;  %v381_v39 = vpack.c.bf16 %v335_v36, %v333_v35  ;;  %v369_v36 = vld [vmem:[#allocation2 + $0x160] sm:$0xff] }
 0x162   : > { %v2117_v40 = vpop.f32.mrf.mxu0  ;;  %689 = vmatprep.subr.bf16.mxu1 %v1845_v1 }
 0x164   : > { %v1520_v42 = vpop.f32.mrf.mxu0 }
 0x165   : > { %690 = vmatpush1.bf16.msra.mxu1 %v633_v41  ;;  %v337_v41 = vld [vmem:[#allocation2 + $0x60] sm:$0xff]  ;;  %v339_v42 = vld [vmem:[#allocation2 + $0x70] sm:$0xff] }
 0x166   : > { %v2120_v43 = vpop.f32.mrf.mxu0  ;;  %691 = vmatprep.subr.bf16.mxu1 %v1845_v1 }
 0x167   : > { %v635_v26 = vpack.c.bf16 %v2120_v43, %v2117_v40  ;;  %v384_v40 = vpack.c.bf16 %v340_v38, %v338_v37  ;;  %v342_v43 = vld [vmem:[#allocation2 + $0x88] sm:$0xff]  ;;  %v371_v37 = vld [vmem:[#allocation2 + $0x170] sm:$0xff] }
 0x168   : > { %v1521_v45 = vpop.f32.mrf.mxu0  ;;  %v374_v38 = vld [vmem:[#allocation2 + $0x188] sm:$0xff] }
 0x169   : > { %692 = vmatpush1.bf16.msra.mxu1 %v632_v44  ;;  %v344_v44 = vld [vmem:[#allocation2 + $0x98] sm:$0xff]  ;;  %v383_v45 = vpack.c.bf16 %v339_v42, %v337_v41  ;;  %v373_v42 = vld [vmem:[#allocation2 + $0x180] sm:$0xff] }
 0x16a   : > { %v2123_v46 = vpop.f32.mrf.mxu0  ;;  %693 = vmatprep.subr.bf16.mxu1 %v1845_v1 }
 0x16c   : > { %v1524_v48 = vpop.f32.mrf.mxu0 }
 0x16d   : > { %694 = vmatpush1.bf16.msra.mxu1 %v631_v47  ;;  %v341_v47 = vld [vmem:[#allocation2 + $0x80] sm:$0xff]  ;;  %v343_v48 = vld [vmem:[#allocation2 + $0x90] sm:$0xff] }
 0x16e   : > { %v599_v49 = vpop.f32.mrf.mxu0  ;;  %695 = vmatprep.subr.bf16.mxu1 %v1845_v1 }
 0x16f   : > { %v636_v21 = vpack.c.bf16 %v599_v49, %v2123_v46  ;;  %v386_v46 = vpack.c.bf16 %v344_v44, %v342_v43  ;;  %v346_v49 = vld [vmem:[#allocation2 + $0xa8] sm:$0xff]  ;;  %v375_v43 = vld [vmem:[#allocation2 + $0x190] sm:$0xff] }
 0x170   : > { %v1525_v51 = vpop.f32.mrf.mxu0  ;;  %v401_v44 = vpack.c.bf16 %v375_v43, %v373_v42 }
 0x171   : > { %696 = vmatpush1.bf16.msra.mxu1 %v630_v50  ;;  %v348_v50 = vld [vmem:[#allocation2 + $0xb8] sm:$0xff]  ;;  %v385_v51 = vpack.c.bf16 %v343_v48, %v341_v47 }
 0x172   : > { %v604_v52 = vpop.f32.mrf.mxu0  ;;  %697 = vmatprep.subr.bf16.mxu1 %v1845_v1 }
 0x174   : > { %v1528_v54 = vpop.f32.mrf.mxu0 }
 0x175   : > { %698 = vmatpush1.bf16.msra.mxu1 %v629_v53  ;;  %v345_v53 = vld [vmem:[#allocation2 + $0xa0] sm:$0xff]  ;;  %v347_v54 = vld [vmem:[#allocation2 + $0xb0] sm:$0xff] }
 0x176   : > { %v607_v55 = vpop.f32.mrf.mxu0  ;;  %699 = vmatprep.subr.bf16.mxu1 %v1845_v1 }
 0x177   : > { %v637_v20 = vpack.c.bf16 %v607_v55, %v604_v52  ;;  %v388_v52 = vpack.c.bf16 %v348_v50, %v346_v49  ;;  %v350_v55 = vld [vmem:[#allocation2 + $0xc8] sm:$0xff] }
 0x178   : > { %v1529_v56 = vpop.f32.mrf.mxu0 }
 0x179   : > { %700 = vmatpush1.bf16.msra.mxu1 %v628_v13  ;;  %v352_v56 = vld [vmem:[#allocation2 + $0xd8] sm:$0xff] }
 0x17a   : > { %v612_v57 = vpop.f32.mrf.mxu0  ;;  %701 = vmatprep.subr.bf16.mxu1 %v1845_v1 }
 0x17c   : > { %v1532_v58 = vpop.f32.mrf.mxu0 }
 0x17d   : > { %702 = vmatpush1.bf16.msra.mxu1 %v627_v8  ;;  %v390_v58 = vpack.c.bf16 %v352_v56, %v350_v55 }
 0x17e   : > { %v615_v2 = vpop.f32.mrf.mxu0  ;;  %709 = vmatprep.subr.bf16.mxu1 %v1845_v1 }
 0x17f   : > { %v638_v18 = vpack.c.bf16 %v615_v2, %v612_v57  ;;  %v387_v57 = vpack.c.bf16 %v347_v54, %v345_v53  ;;  %v392_v2 = vpack.c.bf16 %v356_v62, %v354_v61 }
 0x180   : > { %v1533_v4 = vpop.f32.mrf.mxu0 }
 0x181   : > { %v355_v4 = vld [vmem:[#allocation2 + $0xf0] sm:$0xff] }
 0x182   : > { %v620_v10 = vpop.f32.mrf.mxu0 }
 0x184   : > { %v1536_v12 = vpop.f32.mrf.mxu0 }
 0x185   : > { %v357_v12 = vld [vmem:[#allocation2 + $0x100] sm:$0xff] }
 0x186   : > { %v623_v8 = vpop.f32.mrf.mxu0 }
 0x187   : > { %v639_v13 = vpack.c.bf16 %v623_v8, %v620_v10  ;;  %v391_v10 = vpack.c.bf16 %v355_v4, %v353_v3  ;;  %v364_v8 = vld [vmem:[#allocation2 + $0x138] sm:$0xff] }
 0x188   : > { %v1537_v15 = vpop.f32.mrf.mxu0  ;;  %v396_v14 = vpack.c.bf16 %v364_v8, %v362_v7 }
 0x189   : > { %710 = vmatpush2.bf16.msra.mxu1 %v639_v13  ;;  %v393_v13 = vpack.c.bf16 %v359_v5, %v357_v12  ;;  %v470_v15 = vld [vmem:[#allocation7 + $0x20] sm:$0xff] }
 0x18a   : > { %711 = vmatprep.subr.bf16.mxu1 %v1845_v1  ;;  %v484_v17 = vpack.c.bf16 %v471_v16, %v470_v15 }
 0x18c   : > { %1549 = vmatpush3.bf16.msra.mxu0 %v484_v17 }
 0x18d   : > { %712 = vmatpush2.bf16.msra.mxu1 %v638_v18  ;;  %v361_v18 = vld [vmem:[#allocation2 + $0x120] sm:$0xff]  ;;  %1550 = vmatprep.subr.bf16.mxu0 %v1843_v0 }
 0x18e   : > { %713 = vmatprep.subr.bf16.mxu1 %v1845_v1  ;;  %v395_v25 = vpack.c.bf16 %v363_v19, %v361_v18 }
 0x191   : > { %714 = vmatpush2.bf16.msra.mxu1 %v637_v20  ;;  %v468_v20 = vld [vmem:[#allocation7 + $0x10] sm:$0xff] }
 0x192   : > { %715 = vmatprep.subr.bf16.mxu1 %v1845_v1 }
 0x195   : > { %716 = vmatpush2.bf16.msra.mxu1 %v636_v21  ;;  %v469_v21 = vld [vmem:[#allocation7 + $0x18] sm:$0xff] }
 0x196   : > { %717 = vmatprep.subr.bf16.mxu1 %v1845_v1  ;;  %v483_v24 = vpack.c.bf16 %v469_v21, %v468_v20 }
 0x198   : > { %1551 = vmatpush3.bf16.msra.mxu0 %v483_v24 }
 0x199   : > { %718 = vmatpush2.bf16.msra.mxu1 %v635_v26  ;;  %v398_v26 = vpack.c.bf16 %v368_v23, %v366_v22  ;;  %1552 = vmatprep.subr.bf16.mxu0 %v1843_v0 }
 0x19a   : > { %1087 = vmatprep.subr.bf16.mxu1 %v1845_v1 }
 0x19c   : > { %720 = vmatmul.mubr.bf16.vlgmr.msra.gmra.mxu1 %v377_v27  ;;  %v466_v27 = vld [vmem:[#allocation7] sm:$0xff] }
 0x19d   : > { %1401 = vmatprep.mubr.msk.bf16.mxu1 %vm647_vm1, %v380_v28  ;;  %v467_v28 = vld [vmem:[#allocation7 + $0x8] sm:$0xff] }
 0x19e   : > { %v482_v29 = vpack.c.bf16 %v467_v28, %v466_v27 }
 0x1a0   : > { %1553 = vmatpush3.bf16.msra.mxu0 %v482_v29 }
 0x1a4   : > { %728 = vmatmul.mubr.bf16.gmra.mxu1 %v379_v33  ;;  %v372_v33 = vld [vmem:[#allocation2 + $0x178] sm:$0xff] }
 0x1a5   : > { %1402 = vmatprep.mubr.msk.bf16.mxu1 %vm647_vm1, %v382_v34  ;;  %v397_v34 = vpack.c.bf16 %v367_v31, %v365_v30  ;;  %v400_v35 = vpack.c.bf16 %v372_v33, %v370_v32 }
 0x1ac   : > { %736 = vmatmul.mubr.bf16.gmra.mxu1 %v381_v39  ;;  %v376_v39 = vld [vmem:[#allocation2 + $0x198] sm:$0xff] }
 0x1ad   : > { %1403 = vmatprep.mubr.msk.bf16.mxu1 %vm647_vm1, %v384_v40  ;;  %v399_v40 = vpack.c.bf16 %v371_v37, %v369_v36  ;;  %v402_v41 = vpack.c.bf16 %v376_v39, %v374_v38 }
 0x1b4   : > { %744 = vmatmul.mubr.bf16.gmra.mxu1 %v383_v45  ;;  %v2164_v45 = vld [vmem:[%s2406_s3] ss:$0 sm:$0xff] }
 0x1b5   : > { %1404 = vmatprep.mubr.msk.bf16.mxu1 %vm647_vm1, %v386_v46 }
 0x1bc   : > { %752 = vmatmul.mubr.bf16.gmra.mxu1 %v385_v51 }
 0x1bd   : > { %1405 = vmatprep.mubr.msk.bf16.mxu1 %vm647_vm1, %v388_v52 }
 0x1c4   : > { %760 = vmatmul.mubr.bf16.gmra.mxu1 %v387_v57 }
 0x1c5   : > { %1406 = vmatprep.mubr.msk.bf16.mxu1 %vm647_vm1, %v390_v58 }
 0x1cc   : > { %768 = vmatmul.mubr.bf16.gmra.mxu1 %v389_v63 }
 0x1cd   : > { %1407 = vmatprep.mubr.msk.bf16.mxu1 %vm647_vm1, %v392_v2 }
 0x1d4   : > { %776 = vmatmul.mubr.bf16.gmra.mxu1 %v391_v10 }
 0x1d5   : > { %1408 = vmatprep.mubr.msk.bf16.mxu1 %vm647_vm1, %v394_v11 }
 0x1dc   : > { %784 = vmatmul.mubr.bf16.gmra.mxu1 %v393_v13 }
 0x1dd   : > { %1409 = vmatprep.mubr.msk.bf16.mxu1 %vm647_vm1, %v396_v14 }
 0x1e4   : > { %792 = vmatmul.mubr.bf16.gmra.mxu1 %v395_v25 }
 0x1e5   : > { %1410 = vmatprep.mubr.msk.bf16.mxu1 %vm647_vm1, %v398_v26 }
 0x1ec   : > { %800 = vmatmul.mubr.bf16.gmra.mxu1 %v397_v34 }
 0x1ed   : > { %1411 = vmatprep.mubr.msk.bf16.mxu1 %vm647_vm1, %v400_v35 }
 0x1f4   : > { %808 = vmatmul.mubr.bf16.gmra.mxu1 %v399_v40 }
 0x1f5   : > { %1412 = vmatprep.mubr.msk.bf16.mxu1 %vm647_vm1, %v402_v41 }
 0x1fc   : > { %816 = vmatmul.mubr.bf16.gmra.mxu1 %v401_v44 }
 0x25c   : > { %v721_v46 = vpop.f32.mrf.mxu1 }
 0x25d   : > { %v722_v48 = vadd.f32 %v2164_v45, %v721_v46 }
 0x25e   : > { %v723_v47 = vpop.f32.mrf.mxu1 }
 0x25f   : > { %v824_v52 = vmax.f32 %v722_v48, 0.0 }
 0x260   : > { %v724_v49 = vpop.f32.mrf.mxu1 }
 0x261   : > { %v725_v50 = vadd.f32 %v2164_v45, %v724_v49 }
 0x262   : > { %v726_v51 = vpop.f32.mrf.mxu1 }
 0x263   : > { %v825_v53 = vmax.f32 %v725_v50, 0.0 }
 0x264   : > { %v729_v54 = vpop.f32.mrf.mxu1 }
 0x265   : > { %v850_v55 = vpack.c.bf16 %v825_v53, %v824_v52  ;;  %v730_v57 = vadd.f32 %v2164_v45, %v729_v54 }
 0x266   : > { %v731_v56 = vpop.f32.mrf.mxu1 }
 0x267   : > { %1555 = vmatmul.mubr.bf16.vlgmr.msra.gmra.mxu0 %v850_v55  ;;  %v826_v61 = vmax.f32 %v730_v57, 0.0 }
 0x268   : > { %v732_v58 = vpop.f32.mrf.mxu1  ;;  %1558 = vmatprep.mubr.msk.bf16.mxu0 %vm1844_vm0, %v1843_v0 }
 0x269   : > { %v733_v59 = vadd.f32 %v2164_v45, %v732_v58 }
 0x26a   : > { %v734_v60 = vpop.f32.mrf.mxu1 }
 0x26b   : > { %v827_v62 = vmax.f32 %v733_v59, 0.0 }
 0x26c   : > { %v737_v63 = vpop.f32.mrf.mxu1 }
 0x26d   : > { %v851_v2 = vpack.c.bf16 %v827_v62, %v826_v61  ;;  %v738_v4 = vadd.f32 %v2164_v45, %v737_v63 }
 0x26e   : > { %v739_v3 = vpop.f32.mrf.mxu1 }
 0x26f   : > { %1559 = vmatmul.mubr.bf16.gmra.mxu0 %v851_v2  ;;  %v828_v11 = vmax.f32 %v738_v4, 0.0 }
 0x270   : > { %v740_v6 = vpop.f32.mrf.mxu1  ;;  %1562 = vmatprep.mubr.msk.bf16.mxu0 %vm1844_vm0, %v1843_v0 }
 0x271   : > { %v741_v9 = vadd.f32 %v2164_v45, %v740_v6 }
 0x272   : > { %v742_v10 = vpop.f32.mrf.mxu1 }
 0x273   : > { %v829_v12 = vmax.f32 %v741_v9, 0.0 }
 0x274   : > { %v745_v5 = vpop.f32.mrf.mxu1 }
 0x275   : > { %v852_v7 = vpack.c.bf16 %v829_v12, %v828_v11  ;;  %v746_v13 = vadd.f32 %v2164_v45, %v745_v5 }
 0x276   : > { %v747_v8 = vpop.f32.mrf.mxu1 }
 0x277   : > { %1563 = vmatmul.mubr.bf16.gmra.mxu0 %v852_v7  ;;  %v830_v17 = vmax.f32 %v746_v13, 0.0 }
 0x278   : > { %v748_v14 = vpop.f32.mrf.mxu1  ;;  %1566 = vmatprep.mubr.msk.bf16.mxu0 %vm1844_vm0, %v1843_v0 }
 0x279   : > { %v749_v15 = vadd.f32 %v2164_v45, %v748_v14 }
 0x27a   : > { %v750_v16 = vpop.f32.mrf.mxu1 }
 0x27b   : > { %v831_v18 = vmax.f32 %v749_v15, 0.0 }
 0x27c   : > { %v753_v19 = vpop.f32.mrf.mxu1 }
 0x27d   : > { %v853_v20 = vpack.c.bf16 %v831_v18, %v830_v17  ;;  %v754_v22 = vadd.f32 %v2164_v45, %v753_v19 }
 0x27e   : > { %v755_v21 = vpop.f32.mrf.mxu1 }
 0x27f   : > { %1567 = vmatmul.mubr.bf16.gmra.mxu0 %v853_v20  ;;  %v832_v26 = vmax.f32 %v754_v22, 0.0 }
 0x280   : > { %v756_v23 = vpop.f32.mrf.mxu1  ;;  %1570 = vmatprep.mubr.msk.bf16.mxu0 %vm1844_vm0, %v1843_v0 }
 0x281   : > { %v757_v24 = vadd.f32 %v2164_v45, %v756_v23 }
 0x282   : > { %v758_v25 = vpop.f32.mrf.mxu1 }
 0x283   : > { %v833_v27 = vmax.f32 %v757_v24, 0.0 }
 0x284   : > { %v761_v28 = vpop.f32.mrf.mxu1 }
 0x285   : > { %v854_v29 = vpack.c.bf16 %v833_v27, %v832_v26  ;;  %v762_v31 = vadd.f32 %v2164_v45, %v761_v28 }
 0x286   : > { %v763_v30 = vpop.f32.mrf.mxu1 }
 0x287   : > { %1571 = vmatmul.mubr.bf16.gmra.mxu0 %v854_v29  ;;  %v834_v35 = vmax.f32 %v762_v31, 0.0 }
 0x288   : > { %v764_v32 = vpop.f32.mrf.mxu1  ;;  %1574 = vmatprep.mubr.msk.bf16.mxu0 %vm1844_vm0, %v1843_v0 }
 0x289   : > { %v765_v33 = vadd.f32 %v2164_v45, %v764_v32 }
 0x28a   : > { %v766_v34 = vpop.f32.mrf.mxu1 }
 0x28b   : > { %v835_v36 = vmax.f32 %v765_v33, 0.0 }
 0x28c   : > { %v769_v37 = vpop.f32.mrf.mxu1 }
 0x28d   : > { %v855_v38 = vpack.c.bf16 %v835_v36, %v834_v35  ;;  %v770_v40 = vadd.f32 %v2164_v45, %v769_v37 }
 0x28e   : > { %v771_v39 = vpop.f32.mrf.mxu1 }
 0x28f   : > { %1575 = vmatmul.mubr.bf16.gmra.mxu0 %v855_v38  ;;  %v836_v44 = vmax.f32 %v770_v40, 0.0  ;;  %v1007_v40 = vld [vmem:[%s2217_s16 + $0x8] sm:$0xff] }
 0x290   : > { %v772_v41 = vpop.f32.mrf.mxu1  ;;  %1578 = vmatprep.mubr.msk.bf16.mxu0 %vm1844_vm0, %v1843_v0 }
 0x291   : > { %v773_v42 = vadd.f32 %v2164_v45, %v772_v41  ;;  %v1009_v41 = vld [vmem:[%s2217_s16 + $0x18] sm:$0xff] }
 0x292   : > { %v774_v43 = vpop.f32.mrf.mxu1 }
 0x293   : > { %v837_v46 = vmax.f32 %v773_v42, 0.0  ;;  %v1033_v42 = vpack.c.bf16 %v1009_v41, %v1007_v40 }
 0x294   : > { %v777_v47 = vpop.f32.mrf.mxu1 }
 0x295   : > { %v856_v48 = vpack.c.bf16 %v837_v46, %v836_v44  ;;  %v778_v50 = vadd.f32 %v2164_v45, %v777_v47  ;;  %1416 = vmatprep.mubr.msk.bf16.mxu1 %vm647_vm1, %v1033_v42 }
 0x296   : > { %v779_v49 = vpop.f32.mrf.mxu1 }
 0x297   : > { %1579 = vmatmul.mubr.bf16.gmra.mxu0 %v856_v48  ;;  %v838_v54 = vmax.f32 %v778_v50, 0.0 }
 0x298   : > { %v780_v51 = vpop.f32.mrf.mxu1  ;;  %1582 = vmatprep.mubr.msk.bf16.mxu0 %vm1844_vm0, %v1843_v0 }
 0x299   : > { %v781_v52 = vadd.f32 %v2164_v45, %v780_v51 }
 0x29a   : > { %v782_v53 = vpop.f32.mrf.mxu1 }
 0x29b   : > { %v839_v55 = vmax.f32 %v781_v52, 0.0 }
 0x29c   : > { %v785_v56 = vpop.f32.mrf.mxu1 }
 0x29d   : > { %v857_v57 = vpack.c.bf16 %v839_v55, %v838_v54  ;;  %v786_v59 = vadd.f32 %v2164_v45, %v785_v56 }
 0x29e   : > { %v787_v58 = vpop.f32.mrf.mxu1 }
 0x29f   : > { %1583 = vmatmul.mubr.bf16.gmra.mxu0 %v857_v57  ;;  %v840_v63 = vmax.f32 %v786_v59, 0.0 }
 0x2a0   : > { %v788_v60 = vpop.f32.mrf.mxu1  ;;  %1586 = vmatprep.mubr.msk.bf16.mxu0 %vm1844_vm0, %v1843_v0 }
 0x2a1   : > { %v789_v61 = vadd.f32 %v2164_v45, %v788_v60 }
 0x2a2   : > { %v790_v62 = vpop.f32.mrf.mxu1 }
 0x2a3   : > { %v841_v2 = vmax.f32 %v789_v61, 0.0 }
 0x2a4   : > { %v793_v3 = vpop.f32.mrf.mxu1 }
 0x2a5   : > { %v858_v4 = vpack.c.bf16 %v841_v2, %v840_v63  ;;  %v794_v9 = vadd.f32 %v2164_v45, %v793_v3 }
 0x2a6   : > { %v795_v6 = vpop.f32.mrf.mxu1 }
 0x2a7   : > { %1587 = vmatmul.mubr.bf16.gmra.mxu0 %v858_v4  ;;  %v842_v5 = vmax.f32 %v794_v9, 0.0 }
 0x2a8   : > { %v796_v10 = vpop.f32.mrf.mxu1  ;;  %1590 = vmatprep.mubr.msk.bf16.mxu0 %vm1844_vm0, %v1843_v0 }
 0x2a9   : > { %v797_v11 = vadd.f32 %v2164_v45, %v796_v10 }
 0x2aa   : > { %v798_v12 = vpop.f32.mrf.mxu1 }
 0x2ab   : > { %v843_v7 = vmax.f32 %v797_v11, 0.0  ;;  %v1175_v11 = vld [vmem:[%s2246_s9] sm:$0xff]  ;;  %v1177_v12 = vld [vmem:[%s2246_s9 + $0x10] sm:$0xff] }
 0x2ac   : > { %v801_v8 = vpop.f32.mrf.mxu1  ;;  %1190 = vperm.xlu0 %1686, %v1175_v11   ;;  %1200 = vperm.xlu1 %1687, %v1177_v12   ;;  %v1019_v11 = vld [vmem:[%s2217_s16 + $0x68] sm:$0xff]  ;;  %v1021_v12 = vld [vmem:[%s2217_s16 + $0x78] sm:$0xff] }
 0x2ad   : > { %v859_v13 = vpack.c.bf16 %v843_v7, %v842_v5  ;;  %v802_v15 = vadd.f32 %v2164_v45, %v801_v8  ;;  %v1176_v7 = vld [vmem:[%s2246_s9 + $0x8] sm:$0xff]  ;;  %v1178_v8 = vld [vmem:[%s2246_s9 + $0x18] sm:$0xff] }
 0x2ae   : > { %v803_v14 = vpop.f32.mrf.mxu1 }
 0x2af   : > { %1591 = vmatmul.mubr.bf16.gmra.mxu0 %v859_v13  ;;  %v844_v19 = vmax.f32 %v802_v15, 0.0  ;;  %v1179_v15 = vld [vmem:[%s2246_s9 + $0x20] sm:$0xff] }
 0x2b0   : > { %v804_v16 = vpop.f32.mrf.mxu1  ;;  %1594 = vmatprep.mubr.msk.bf16.mxu0 %vm1844_vm0, %v1843_v0  ;;  %1195 = vperm.xlu0 %1686, %v1176_v7   ;;  %v1039_v7 = vpack.c.bf16 %v1021_v12, %v1019_v11 }
 0x2b1   : > { %v805_v17 = vadd.f32 %v2164_v45, %v804_v16  ;;  %1205 = vperm.xlu1 %1687, %v1178_v8   ;;  %v1180_v16 = vld [vmem:[%s2246_s9 + $0x28] sm:$0xff]  ;;  %v1018_v8 = vld [vmem:[%s2217_s16 + $0x60] sm:$0xff] }
 0x2b2   : > { %v806_v18 = vpop.f32.mrf.mxu1 }
 0x2b3   : > { %v845_v20 = vmax.f32 %v805_v17, 0.0 }
 0x2b4   : > { %v809_v21 = vpop.f32.mrf.mxu1  ;;  %1210 = vperm.xlu0 %1686, %v1179_v15   ;;  %v1025_v15 = vld [vmem:[%s2217_s16 + $0x98] sm:$0xff] }
 0x2b5   : > { %v860_v22 = vpack.c.bf16 %v845_v20, %v844_v19  ;;  %v810_v24 = vadd.f32 %v2164_v45, %v809_v21  ;;  %1215 = vperm.xlu1 %1687, %v1180_v16   ;;  %v1181_v19 = vld [vmem:[%s2246_s9 + $0x30] sm:$0xff]  ;;  %v1182_v21 = vld [vmem:[%s2246_s9 + $0x38] sm:$0xff] }
 0x2b6   : > { %v811_v23 = vpop.f32.mrf.mxu1 }
 0x2b7   : > { %1595 = vmatmul.mubr.bf16.gmra.mxu0 %v860_v22  ;;  %v846_v28 = vmax.f32 %v810_v24, 0.0  ;;  %v1183_v24 = vld [vmem:[%s2246_s9 + $0x40] sm:$0xff] }
 0x2b8   : > { %v812_v25 = vpop.f32.mrf.mxu1  ;;  %1598 = vmatprep.mubr.msk.bf16.mxu0 %vm1844_vm0, %v1843_v0  ;;  %1220 = vperm.xlu0 %1686, %v1181_v19   ;;  %v1024_v19 = vld [vmem:[%s2217_s16 + $0x90] sm:$0xff] }
 0x2b9   : > { %v813_v26 = vadd.f32 %v2164_v45, %v812_v25  ;;  %1225 = vperm.xlu1 %1687, %v1182_v21   ;;  %v1029_v21 = vld [vmem:[%s2217_s16 + $0xb8] sm:$0xff] }
 0x2ba   : > { %v814_v27 = vpop.f32.mrf.mxu1 }
 0x2bb   : > { %v847_v29 = vmax.f32 %v813_v26, 0.0  ;;  %v1184_v26 = vld [vmem:[%s2246_s9 + $0x48] sm:$0xff] }
 0x2bc   : > { %v817_v30 = vpop.f32.mrf.mxu1  ;;  %1230 = vperm.xlu0 %1686, %v1183_v24   ;;  %v1026_v24 = vld [vmem:[%s2217_s16 + $0xa0] sm:$0xff] }
 0x2bd   : > { %v861_v31 = vpack.c.bf16 %v847_v29, %v846_v28  ;;  %v818_v33 = vadd.f32 %v2164_v45, %v817_v30  ;;  %v1185_v29 = vld [vmem:[%s2246_s9 + $0x50] sm:$0xff]  ;;  %1235 = vperm.xlu1 %1687, %v1184_v26   ;;  %v1031_v26 = vld [vmem:[%s2217_s16 + $0xc8] sm:$0xff] }
 0x2be   : > { %v819_v32 = vpop.f32.mrf.mxu1 }
 0x2bf   : > { %1599 = vmatmul.mubr.bf16.gmra.mxu0 %v861_v31  ;;  %v848_v37 = vmax.f32 %v818_v33, 0.0  ;;  %v1186_v31 = vld [vmem:[%s2246_s9 + $0x58] sm:$0xff] }
 0x2c0   : > { %v820_v34 = vpop.f32.mrf.mxu1  ;;  %1602 = vmatprep.mubr.msk.bf16.mxu0 %vm1844_vm0, %v1843_v0  ;;  %1240 = vperm.xlu0 %1686, %v1185_v29   ;;  %v1030_v29 = vld [vmem:[%s2217_s16 + $0xc0] sm:$0xff] }
 0x2c1   : > { %v821_v35 = vadd.f32 %v2164_v45, %v820_v34  ;;  %v1187_v34 = vld [vmem:[%s2246_s9 + $0x60] sm:$0xff]  ;;  %1245 = vperm.xlu1 %1687, %v1186_v31   ;;  %s1772_s9 = scalar_lea.vmem %s1771_s8, 3328 }
 0x2c2   : > { %v822_v36 = vpop.f32.mrf.mxu1  ;;  %v2320_v31 = vld [vmem:[%s2408_s5] ss:$0 sm:$0xff]  ;;  %p1774_p8 = scmp.lt.s32.totalorder %s1772_s9, %s1766_s21 }
 0x2c3   : > { %v849_v38 = vmax.f32 %v821_v35, 0.0 }
 0x2c4   : > { %1250 = vperm.xlu0 %1686, %v1187_v34   ;;  %p1775_p11 = por %p1774_p8, %p1773_p7 }
 0x2c5   : > { %v862_v39 = vpack.c.bf16 %v849_v38, %v848_v37 }
 0x2c6   : > { %p1776_p0 = pnand %p1775_p11, %p1769_p13 }
 0x2c7   : > { %1603 = vmatmul.mubr.bf16.gmra.mxu0 %v862_v39 }
 0x327   : > { %v2222_v0 = vpop.f32.mrf.mxu0 }
 0x329   : > { %v1556_v45 = vpop.f32.mrf.mxu0 }
 0x32b   : > { %v2224_v43 = vpop.f32.mrf.mxu0 }
 0x32c   : > { %v1046_v44 = vpack.c.bf16 %v2224_v43, %v2222_v0 }
 0x32d   : > { %v1557_v46 = vpop.f32.mrf.mxu0 }
 0x32f   : > { %v2228_v47 = vpop.f32.mrf.mxu0 }
 0x331   : > { %v1560_v48 = vpop.f32.mrf.mxu0 }
 0x333   : > { %v2230_v49 = vpop.f32.mrf.mxu0 }
 0x334   : > { %v1047_v50 = vpack.c.bf16 %v2230_v49, %v2228_v47 }
 0x335   : > { %v1561_v51 = vpop.f32.mrf.mxu0 }
 0x337   : > { %v2234_v52 = vpop.f32.mrf.mxu0 }
 0x339   : > { %v1564_v53 = vpop.f32.mrf.mxu0 }
 0x33b   : > { %v2236_v54 = vpop.f32.mrf.mxu0 }
 0x33c   : > { %v1048_v41 = vpack.c.bf16 %v2236_v54, %v2234_v52 }
 0x33d   : > { %v1565_v55 = vpop.f32.mrf.mxu0 }
 0x33f   : > { %v2238_v56 = vpop.f32.mrf.mxu0 }
 0x341   : > { %v1568_v57 = vpop.f32.mrf.mxu0 }
 0x342   : > { %v1008_v57 = vld [vmem:[%s2217_s16 + $0x10] sm:$0xff] }
 0x343   : > { %v2240_v58 = vpop.f32.mrf.mxu0 }
 0x344   : > { %v1049_v38 = vpack.c.bf16 %v2240_v58, %v2238_v56  ;;  %v1011_v58 = vld [vmem:[%s2217_s16 + $0x28] sm:$0xff] }
 0x345   : > { %v1569_v59 = vpop.f32.mrf.mxu0 }
 0x346   : > { %v1013_v59 = vld [vmem:[%s2217_s16 + $0x38] sm:$0xff] }
 0x347   : > { %v929_v60 = vpop.f32.mrf.mxu0 }
 0x349   : > { %v1572_v61 = vpop.f32.mrf.mxu0 }
 0x34b   : > { %v932_v62 = vpop.f32.mrf.mxu0 }
 0x34c   : > { %v1050_v35 = vpack.c.bf16 %v932_v62, %v929_v60  ;;  %v1035_v62 = vpack.c.bf16 %v1013_v59, %v1011_v58 }
 0x34d   : > { %v1573_v63 = vpop.f32.mrf.mxu0 }
 0x34e   : > { %v1010_v63 = vld [vmem:[%s2217_s16 + $0x20] sm:$0xff] }
 0x34f   : > { %v937_v2 = vpop.f32.mrf.mxu0 }
 0x351   : > { %v1576_v3 = vpop.f32.mrf.mxu0 }
 0x352   : > { %v1015_v3 = vld [vmem:[%s2217_s16 + $0x48] sm:$0xff] }
 0x353   : > { %v940_v4 = vpop.f32.mrf.mxu0 }
 0x354   : > { %v1051_v30 = vpack.c.bf16 %v940_v4, %v937_v2  ;;  %v1012_v2 = vld [vmem:[%s2217_s16 + $0x30] sm:$0xff] }
 0x355   : > { %v1577_v6 = vpop.f32.mrf.mxu0  ;;  %v1034_v4 = vpack.c.bf16 %v1012_v2, %v1010_v63 }
 0x357   : > { %v945_v9 = vpop.f32.mrf.mxu0 }
 0x359   : > { %v1580_v10 = vpop.f32.mrf.mxu0 }
 0x35a   : > { %v1016_v10 = vld [vmem:[%s2217_s16 + $0x50] sm:$0xff] }
 0x35b   : > { %v948_v5 = vpop.f32.mrf.mxu0 }
 0x35c   : > { %v1052_v25 = vpack.c.bf16 %v948_v5, %v945_v9  ;;  %v1014_v9 = vld [vmem:[%s2217_s16 + $0x40] sm:$0xff] }
 0x35d   : > { %v1581_v13 = vpop.f32.mrf.mxu0  ;;  %v1036_v5 = vpack.c.bf16 %v1016_v10, %v1014_v9 }
 0x35e   : > { %v1020_v13 = vld [vmem:[%s2217_s16 + $0x70] sm:$0xff] }
 0x35f   : > { %v953_v14 = vpop.f32.mrf.mxu0  ;;  %v1038_v16 = vpack.c.bf16 %v1020_v13, %v1018_v8 }
 0x361   : > { %v1584_v17 = vpop.f32.mrf.mxu0 }
 0x363   : > { %v956_v18 = vpop.f32.mrf.mxu0 }
 0x364   : > { %v1053_v20 = vpack.c.bf16 %v956_v18, %v953_v14  ;;  %v1023_v14 = vld [vmem:[%s2217_s16 + $0x88] sm:$0xff]  ;;  %v1022_v18 = vld [vmem:[%s2217_s16 + $0x80] sm:$0xff] }
 0x365   : > { %v1585_v22 = vpop.f32.mrf.mxu0  ;;  %v1041_v17 = vpack.c.bf16 %v1025_v15, %v1023_v14 }
 0x366   : > { %1088 = vmatpush1.bf16.msra.mxu1 %v1053_v20  ;;  %v1027_v20 = vld [vmem:[%s2217_s16 + $0xa8] sm:$0xff]  ;;  %v1040_v22 = vpack.c.bf16 %v1024_v19, %v1022_v18 }
 0x367   : > { %v2256_v23 = vpop.f32.mrf.mxu0  ;;  %1089 = vmatprep.subr.bf16.mxu1 %v1845_v1 }
 0x369   : > { %v1588_v27 = vpop.f32.mrf.mxu0 }
 0x36a   : > { %1090 = vmatpush1.bf16.msra.mxu1 %v1052_v25  ;;  %v1028_v25 = vld [vmem:[%s2217_s16 + $0xb0] sm:$0xff] }
 0x36b   : > { %v964_v28 = vpop.f32.mrf.mxu0  ;;  %1091 = vmatprep.subr.bf16.mxu1 %v1845_v1  ;;  %v1042_v27 = vpack.c.bf16 %v1028_v25, %v1026_v24 }
 0x36c   : > { %v1054_v60 = vpack.c.bf16 %v964_v28, %v2256_v23  ;;  %v1043_v23 = vpack.c.bf16 %v1029_v21, %v1027_v20  ;;  %v1045_v28 = vpack.c.bf16 %v1031_v26, %v1031_v26 }
 0x36d   : > { %v1589_v32 = vpop.f32.mrf.mxu0 }
 0x36e   : > { %1092 = vmatpush1.bf16.msra.mxu1 %v1051_v30  ;;  %v1044_v30 = vpack.c.bf16 %v1030_v29, %v1030_v29  ;;  %v1191_v32 = vpop.permute.xlu0 %1190 }
 0x36f   : > { %v969_v33 = vpop.f32.mrf.mxu0  ;;  %1093 = vmatprep.subr.bf16.mxu1 %v1845_v1 }
 0x371   : > { %v1592_v36 = vpop.f32.mrf.mxu0 }
 0x372   : > { %1094 = vmatpush1.bf16.msra.mxu1 %v1050_v35 }
 0x373   : > { %v972_v37 = vpop.f32.mrf.mxu0  ;;  %1095 = vmatprep.subr.bf16.mxu1 %v1845_v1 }
 0x374   : > { %v1055_v43 = vpack.c.bf16 %v972_v37, %v969_v33 }
 0x375   : > { %v1593_v39 = vpop.f32.mrf.mxu0 }
 0x376   : > { %1096 = vmatpush1.bf16.msra.mxu1 %v1049_v38  ;;  %v1196_v38 = vpop.permute.xlu0 %1195 }
 0x377   : > { %v977_v40 = vpop.f32.mrf.mxu0  ;;  %1097 = vmatprep.subr.bf16.mxu1 %v1845_v1 }
 0x379   : > { %v1596_v42 = vpop.f32.mrf.mxu0 }
 0x37a   : > { %1098 = vmatpush1.bf16.msra.mxu1 %v1048_v41  ;;  %v1201_v41 = vpop.permute.xlu1 %1200 }
 0x37b   : > { %v980_v45 = vpop.f32.mrf.mxu0  ;;  %1099 = vmatprep.subr.bf16.mxu1 %v1845_v1 }
 0x37c   : > { %v1056_v0 = vpack.c.bf16 %v980_v45, %v977_v40 }
 0x37d   : > { %v1597_v46 = vpop.f32.mrf.mxu0 }
 0x37e   : > { %1100 = vmatpush1.bf16.msra.mxu1 %v1047_v50 }
 0x37f   : > { %v985_v48 = vpop.f32.mrf.mxu0  ;;  %1101 = vmatprep.subr.bf16.mxu1 %v1845_v1 }
 0x381   : > { %v1600_v51 = vpop.f32.mrf.mxu0 }
 0x382   : > { %1102 = vmatpush1.bf16.msra.mxu1 %v1046_v44  ;;  %v1006_v44 = vld [vmem:[%s2217_s16] sm:$0xff] }
 0x383   : > { %v988_v53 = vpop.f32.mrf.mxu0  ;;  %1109 = vmatprep.subr.bf16.mxu1 %v1845_v1  ;;  %v1032_v61 = vpack.c.bf16 %v1008_v57, %v1006_v44 }
 0x384   : > { %v1057_v50 = vpack.c.bf16 %v988_v53, %v985_v48 }
 0x385   : > { %v1601_v52 = vpop.f32.mrf.mxu0 }
 0x386   : > { %v1206_v52 = vpop.permute.xlu1 %1205 }
 0x387   : > { %v993_v54 = vpop.f32.mrf.mxu0 }
 0x389   : > { %v1604_v55 = vpop.f32.mrf.mxu0 }
 0x38a   : > { %v1216_v59 = vpop.permute.xlu1 %1215 }
 0x38b   : > { %v996_v56 = vpop.f32.mrf.mxu0 }
 0x38c   : > { %v1058_v47 = vpack.c.bf16 %v996_v56, %v993_v54 }
 0x38d   : > { %v1605_v49 = vpop.f32.mrf.mxu0 }
 0x38e   : > { %1110 = vmatpush2.bf16.msra.mxu1 %v1058_v47  ;;  %v1226_v9 = vpop.permute.xlu1 %1225 }
 0x38f   : > { %1111 = vmatprep.subr.bf16.mxu1 %v1845_v1 }
 0x392   : > { %1112 = vmatpush2.bf16.msra.mxu1 %v1057_v50 }
 0x393   : > { %1113 = vmatprep.subr.bf16.mxu1 %v1845_v1 }
 0x396   : > { %1114 = vmatpush2.bf16.msra.mxu1 %v1056_v0  ;;  %v1211_v0 = vpop.permute.xlu0 %1210 }
 0x397   : > { %1115 = vmatprep.subr.bf16.mxu1 %v1845_v1 }
 0x39a   : > { %1116 = vmatpush2.bf16.msra.mxu1 %v1055_v43  ;;  %v1221_v2 = vpop.permute.xlu0 %1220 }
 0x39b   : > { %1117 = vmatprep.subr.bf16.mxu1 %v1845_v1  ;;  %v1017_v1 = vld [vmem:[%s2217_s16 + $0x58] sm:$0xff] }
 0x39c   : > { %v1037_v6 = vpack.c.bf16 %v1017_v1, %v1015_v3 }
 0x39e   : > { %1118 = vmatpush2.bf16.msra.mxu1 %v1054_v60 }
 0x3a1   : > { %1120 = vmatmul.mubr.bf16.vlgmr.msra.gmra.mxu1 %v1032_v61 }
 0x3a2   : > { %1417 = vmatprep.mubr.msk.bf16.mxu1 %vm647_vm1, %v1035_v62 }
 0x3a9   : > { %1128 = vmatmul.mubr.bf16.gmra.mxu1 %v1034_v4 }
 0x3aa   : > { %1418 = vmatprep.mubr.msk.bf16.mxu1 %vm647_vm1, %v1037_v6 }
 0x3b1   : > { %1136 = vmatmul.mubr.bf16.gmra.mxu1 %v1036_v5 }
 0x3b2   : > { %1419 = vmatprep.mubr.msk.bf16.mxu1 %vm647_vm1, %v1039_v7  ;;  %v1231_v7 = vpop.permute.xlu0 %1230 }
 0x3b6   : > { %v1241_v21 = vpop.permute.xlu0 %1240 }
 0x3b9   : > { %1144 = vmatmul.mubr.bf16.gmra.mxu1 %v1038_v16  ;;  %v1236_v16 = vpop.permute.xlu1 %1235 }
 0x3ba   : > { %1420 = vmatprep.mubr.msk.bf16.mxu1 %vm647_vm1, %v1041_v17 }
 0x3bd   : > { %v1246_v26 = vpop.permute.xlu1 %1245 }
 0x3c1   : > { %1152 = vmatmul.mubr.bf16.gmra.mxu1 %v1040_v22 }
 0x3c2   : > { %1421 = vmatprep.mubr.msk.bf16.mxu1 %vm647_vm1, %v1043_v23 }
 0x3c9   : > { %1160 = vmatmul.mubr.bf16.gmra.mxu1 %v1042_v27 }
 0x3ca   : > { %1422 = vmatprep.mubr.msk.bf16.mxu1 %vm647_vm1, %v1045_v28 }
 0x3d1   : > { %1168 = vmatmul.mubr.bf16.gmra.mxu1 %v1044_v30  ;;  %v1251_v30 = vpop.permute.xlu0 %1250 }
 0x461   : > { %v1121_v33 = vpop.f32.mrf.mxu1 }
 0x462   : > { %v1122_v34 = vadd.f32 %v2320_v31, %v1121_v33 }
 0x463   : > { %v1123_v35 = vpop.f32.mrf.mxu1 }
 0x464   : > { %v1253_v36 = vmul.f32 %v1191_v32, %v1122_v34 }
 0x465   : > { %v1124_v37 = vpop.f32.mrf.mxu1 }
 0x466   : > { %v1125_v39 = vadd.f32 %v2320_v31, %v1124_v37  ;;  %1266 = vst [vmem:[%s2326_s22] sm:$0xff] %v1253_v36 }
 0x467   : > { %v1126_v40 = vpop.f32.mrf.mxu1 }
 0x468   : > { %v1254_v42 = vmul.f32 %v1196_v38, %v1125_v39 }
 0x469   : > { %v1129_v45 = vpop.f32.mrf.mxu1 }
 0x46a   : > { %v1130_v46 = vadd.f32 %v2320_v31, %v1129_v45  ;;  %1267 = vst [vmem:[%s2326_s22 + $0x8] sm:$0xff] %v1254_v42 }
 0x46b   : > { %v1131_v48 = vpop.f32.mrf.mxu1 }
 0x46c   : > { %v1255_v51 = vmul.f32 %v1201_v41, %v1130_v46 }
 0x46d   : > { %v1132_v53 = vpop.f32.mrf.mxu1 }
 0x46e   : > { %v1133_v54 = vadd.f32 %v2320_v31, %v1132_v53  ;;  %1268 = vst [vmem:[%s2326_s22 + $0x10] sm:$0xff] %v1255_v51 }
 0x46f   : > { %v1134_v55 = vpop.f32.mrf.mxu1 }
 0x470   : > { %v1256_v56 = vmul.f32 %v1206_v52, %v1133_v54 }
 0x471   : > { %v1137_v47 = vpop.f32.mrf.mxu1 }
 0x472   : > { %v1138_v49 = vadd.f32 %v2320_v31, %v1137_v47  ;;  %1269 = vst [vmem:[%s2326_s22 + $0x18] sm:$0xff] %v1256_v56 }
 0x473   : > { %v1139_v50 = vpop.f32.mrf.mxu1 }
 0x474   : > { %v1257_v43 = vmul.f32 %v1211_v0, %v1138_v49 }
 0x475   : > { %v1140_v44 = vpop.f32.mrf.mxu1 }
 0x476   : > { %v1141_v57 = vadd.f32 %v2320_v31, %v1140_v44  ;;  %1270 = vst [vmem:[%s2326_s22 + $0x20] sm:$0xff] %v1257_v43 }
 0x477   : > { %v1142_v58 = vpop.f32.mrf.mxu1 }
 0x478   : > { %v1258_v60 = vmul.f32 %v1216_v59, %v1141_v57 }
 0x479   : > { %v1145_v61 = vpop.f32.mrf.mxu1 }
 0x47a   : > { %v1146_v62 = vadd.f32 %v2320_v31, %v1145_v61  ;;  %1271 = vst [vmem:[%s2326_s22 + $0x28] sm:$0xff] %v1258_v60 }
 0x47b   : > { %v1147_v63 = vpop.f32.mrf.mxu1 }
 0x47c   : > { %v1259_v3 = vmul.f32 %v1221_v2, %v1146_v62 }
 0x47d   : > { %v1148_v1 = vpop.f32.mrf.mxu1 }
 0x47e   : > { %v1149_v4 = vadd.f32 %v2320_v31, %v1148_v1  ;;  %1272 = vst [vmem:[%s2326_s22 + $0x30] sm:$0xff] %v1259_v3 }
 0x47f   : > { %v1150_v6 = vpop.f32.mrf.mxu1 }
 0x480   : > { %v1260_v10 = vmul.f32 %v1226_v9, %v1149_v4 }
 0x481   : > { %v1153_v11 = vpop.f32.mrf.mxu1 }
 0x482   : > { %v1154_v12 = vadd.f32 %v2320_v31, %v1153_v11  ;;  %1273 = vst [vmem:[%s2326_s22 + $0x38] sm:$0xff] %v1260_v10 }
 0x483   : > { %v1155_v5 = vpop.f32.mrf.mxu1 }
 0x484   : > { %v1261_v8 = vmul.f32 %v1231_v7, %v1154_v12 }
 0x485   : > { %v1156_v13 = vpop.f32.mrf.mxu1 }
 0x486   : > { %v1157_v14 = vadd.f32 %v2320_v31, %v1156_v13  ;;  %1274 = vst [vmem:[%s2326_s22 + $0x40] sm:$0xff] %v1261_v8 }
 0x487   : > { %v1158_v15 = vpop.f32.mrf.mxu1 }
 0x488   : > { %v1262_v17 = vmul.f32 %v1236_v16, %v1157_v14 }
 0x489   : > { %v1161_v18 = vpop.f32.mrf.mxu1 }
 0x48a   : > { %v1162_v19 = vadd.f32 %v2320_v31, %v1161_v18  ;;  %1275 = vst [vmem:[%s2326_s22 + $0x48] sm:$0xff] %v1262_v17 }
 0x48b   : > { %v1163_v20 = vpop.f32.mrf.mxu1 }
 0x48c   : > { %v1263_v22 = vmul.f32 %v1241_v21, %v1162_v19 }
 0x48d   : > { %v1164_v23 = vpop.f32.mrf.mxu1 }
 0x48e   : > { %v1165_v24 = vadd.f32 %v2320_v31, %v1164_v23  ;;  %1276 = vst [vmem:[%s2326_s22 + $0x50] sm:$0xff] %v1263_v22 }
 0x48f   : > { %v1166_v25 = vpop.f32.mrf.mxu1 }
 0x490   : > { %v1264_v27 = vmul.f32 %v1246_v26, %v1165_v24 }
 0x491   : > { %v1169_v28 = vpop.f32.mrf.mxu1 }
 0x492   : > { %v1170_v29 = vadd.f32 %v2320_v31, %v1169_v28  ;;  %1277 = vst [vmem:[%s2326_s22 + $0x58] sm:$0xff] %v1264_v27 }
 0x493   : > { %v1171_v32 = vpop.f32.mrf.mxu1 }
 0x494   : > { %v1265_v33 = vmul.f32 %v1251_v30, %v1170_v29 }
 0x495   : > { %v1172_v34 = vpop.f32.mrf.mxu1 }
 0x496   : > { %1278 = vst [vmem:[%s2326_s22 + $0x60] sm:$0xff] %v1265_v33 }
 0x497   : > { %v1173_v35 = vpop.f32.mrf.mxu1 }
 0x498   : > { %1779 = shalt.err (!%p1776_p0)
}
 0x499   : > { %s1780_s14 = scalar_lea.hbm %s2356_s20, 1664  ;;  %s1784_s19 = scalar_lea.hbm %s2410_s7, 3328 }
 0x49a   : > { %p1781_p1 = scmp.ne.s32.totalorder %s2356_s20, %s1780_s14  ;;  %p1785_p4 = scmp.lt.s32.totalorder %s2356_s20, %s2410_s7 }
 0x49b   : > { %p1786_p9 = scmp.lt.s32.totalorder %s1784_s19, %s1780_s14 }
 0x49c   : > { %p1782_p2 = pnand %p1781_p1, %p1927_p5 }
 0x49d   : > { %p1787_p10 = por %p1786_p9, %p1785_p4 }
 0x49e   : > { %p1783_p3 = pneg %p1782_p2 }
 0x4a0   : > { %p1788_p12 = pnand %p1787_p10, %p1783_p3 }
 0x4a2   : > { %1791 = shalt.err (!%p1788_p12)
}
 0x4a3   : > { %s1847_s13 = smov 128   ;;  %s1848_s16 = smov 8  }
 0x4a4   : > { %1619 = dma.vmem_to_hbm [thread:$0]  (%p1927_p5), %s2358_s23, 1664, %s2356_s20, %s2363_s28, %s1847_s13, %s1847_s13, %s1848_s16  }
 0x4a5 PF: > { %p1641_p13 = scmp.ge.s32.totalorder %s1834_s27, 2  ;;  %s1308_s21 = sand.u32 1, %s1822_s24  }
 0x4a6   : > { %s1309_s29 = scalar_lea.sflag [#allocation4], %s1308_s21 }
 0x4a7   : > { %p1632_p7 = pnand %p1641_p13, %p1931_p6 }
 0x4a9   : > { %p1633_p8 = pneg %p1632_p7 }
 0x4ab   : > { %1817 = dma.done.wait (%p1633_p8), %s1309_s29, 1664  }
 0x4ac   : > { %1819 = vsyncadd (%p1633_p8), %s1309_s29, 4294965632  ;;  %p19_p11 = scmp.ge.s32.totalorder %s1914_s30, 4   ;;  %s2415_s24 = smov %s1826_s25 }
 0x4ad   : > { %s2416_s25 = smov %s1830_s26  ;;  %s2417_s26 = smov %s1925_s10 }
 0x4ae   : > { %s2418_s27 = smov %s1914_s30  ;;  %21 = sbr.rel (!%p19_p11) target bundleno = 5 (0x5), region = 97 }
 0x4b3   :  { %1314 = vsyncpa [#allocation3], 1 }
 0x4b4   :  { %1316 = vsyncpa [#allocation3 + $0x1], 1 }
 0x4b5   :  { %1317 = vsyncpa [#allocation6], 1 }
 0x4b6   :  { %1318 = vsyncpa [#allocation4], 1 }
 0x4b7   :  { %1320 = vsyncpa [#allocation4 + $0x1], 1 }

</bundles_post_ra>
